<compile_context>
chip_gen: v5e
topology: v5e:2x2
jax: 0.10.0
libtpu: 0.0.40
codegen_flags: <defaults>
</compile_context>

<pallas_src>
import functools

import jax
import jax.numpy as jnp
from jax.experimental import pallas as pl
from jax.experimental.pallas import tpu as pltpu

_LANE = 128
_SUBLANE = 8


def _round_up(x, m):
    return ((x + m - 1) // m) * m


def _tpu_generation(default=None):
    """Best-effort TPU generation (5, 6, 7, ...) from the device kind string."""
    try:
        kind = jax.devices()[0].device_kind.lower()
    except Exception:
        return default
    for gen in (7, 6, 5, 4, 3):
        if str(gen) in kind:
            return gen
    return default


def _vmem_limit_bytes(gen):
    # v5e/v6e: 128 MiB physical VMEM -> raise the scoped limit well above the
    # 16/32 MiB defaults. v7x: only 64 MiB physical per TC -> stay <= 48 MiB.
    if gen is not None and gen >= 7:
        return 48 << 20
    if gen in (5, 6):
        return 64 << 20
    return 32 << 20


def _default_bf16_wag(gen):
    # v6e/v7x MXUs are natively bf16; the additive/gate matmul error is linear
    # (no exp amplification) so bf16 operands are safe there. v5e stays f32.
    return gen in (6, 7)


def _nalu_kernel(x_ref, wag_ref, wmul_ref, o_ref, *, epsilon, out_pad):
    # x block: (TB, in_pad) f32 (lane-dense, zero-padded K columns).
    # wag:     (in_pad, 2*out_pad) = [W_nac.T | G.T], f32 or bf16.
    # wmul:    (in_pad, out_pad)   = W.T, always f32.
    x = x_ref[...].astype(jnp.float32)

    # One wider MXU call for the two x-LHS paths (additive NAC + gate logits).
    ag = jnp.dot(x.astype(wag_ref.dtype), wag_ref[...],
                 preferred_element_type=jnp.float32)            # (TB, 2*out_pad)
    a = ag[:, :out_pad]
    # sigmoid(z) = 0.5*(1 + tanh(z/2)): single EUP op instead of exp + divide.
    g = 0.5 * (1.0 + jnp.tanh(0.5 * ag[:, out_pad:]))

    # Multiplicative (log-space) path, f32 end to end.
    log_x = jnp.log(jnp.abs(x) + epsilon)
    m = jnp.exp(jnp.dot(log_x, wmul_ref[...], preferred_element_type=jnp.float32))

    # g*a + (1-g)*m  ==  m + g*(a - m)   (one fewer VPU multiply).
    o_ref[...] = (m + g * (a - m)).astype(o_ref.dtype)


def _choose_batch_tile(batch, in_pad, out_pad, wag_itemsize, *,
                       vmem_budget_bytes, weight_buffers=1,
                       out_itemsize=4, max_tile=2048):
    """Largest batch tile that fits the VMEM budget (honest accounting)."""
    # Resident weights (buffer count matches the pipeline_mode of their specs).
    weight_bytes = weight_buffers * (
        in_pad * 2 * out_pad * wag_itemsize          # [W_nac.T | G.T]
        + in_pad * out_pad * 4)                      # W.T (f32)
    # Per batch-row bytes: double-buffered x / out tiles + in-kernel
    # temporaries (f32 x copy, log_x, ag, a/g/m, plus the bf16 cast of x).
    io_bytes = 2 * in_pad * 4 + 2 * out_pad * out_itemsize
    temp_bytes = (2 * in_pad + 4 * out_pad) * 4 + in_pad * wag_itemsize
    per_row = io_bytes + temp_bytes
    avail = max(vmem_budget_bytes - weight_bytes, per_row * _SUBLANE)
    tb = int(min(avail // per_row, max_tile, max(batch, _SUBLANE)))
    return max((tb // _SUBLANE) * _SUBLANE, _SUBLANE)


def prepare_nalu_params(W_hat, M_hat, G, W, *, wag_dtype=jnp.float32):
    """Fuse / transpose / pad the NALU weights once.

    If the weights are static across calls, jit and cache this (it is the only
    per-call work outside the kernel). Returns:
      wag = [W_nac.T | G.T]  shape (in_pad, 2*out_pad), dtype wag_dtype
      w_t = W.T              shape (in_pad, out_pad),  f32
    Zero padding of extra rows/cols keeps all dot products exact.
    """
    out_dim, in_dim = G.shape
    in_pad = _round_up(in_dim, _LANE)
    out_pad = _round_up(out_dim, _LANE)

    w_nac_t = (jnp.tanh(W_hat) * jax.nn.sigmoid(M_hat)).T       # (In, Out)
    g_t = jnp.transpose(G)
    w_t = jnp.transpose(W)
    pad = ((0, in_pad - in_dim), (0, out_pad - out_dim))
    if pad != ((0, 0), (0, 0)):
        w_nac_t = jnp.pad(w_nac_t, pad)
        g_t = jnp.pad(g_t, pad)
        w_t = jnp.pad(w_t, pad)
    wag = jnp.concatenate([w_nac_t, g_t], axis=1).astype(wag_dtype)
    return wag, w_t.astype(jnp.float32)


def nalu_forward_prepared(x, wag, w_t, out_dim, *, epsilon=1e-5,
                          block_batch=None, out_dtype=jnp.float32,
                          single_buffer_weights=True):
    B, in_dim = x.shape
    in_pad, two_out_pad = wag.shape
    out_pad = two_out_pad // 2
    wag_itemsize = jnp.dtype(wag.dtype).itemsize

    gen = _tpu_generation()
    vmem_limit = _vmem_limit_bytes(gen)

    # ---- Batch tiling (VMEM-budget driven; ~8 MiB headroom below the limit).
    if block_batch is None:
        block_batch = _choose_batch_tile(
            B, in_pad, out_pad, wag_itemsize,
            vmem_budget_bytes=vmem_limit - (8 << 20),
            weight_buffers=1 if single_buffer_weights else 2,
            out_itemsize=jnp.dtype(out_dtype).itemsize)
    tb = max(_SUBLANE, (min(block_batch, max(B, _SUBLANE)) // _SUBLANE) * _SUBLANE)
    if gen is not None and gen >= 7 and B > _SUBLANE:
        # >= 2 grid steps so dimension_semantics=("parallel",) shards across
        # v7x's two TensorCores instead of leaving one idle.
        tb = min(tb, _round_up((B + 1) // 2, _SUBLANE))
    b_pad = _round_up(B, tb)

    # ---- Lane-dense x: pad K to a multiple of 128 with zeros (matching zero
    # weight rows), and pad dead batch rows with 1.0 so log(1+eps)~0 keeps the
    # mul path finite for them.
    x_in = x.astype(jnp.float32)
    if in_pad != in_dim:
        x_in = jnp.pad(x_in, ((0, 0), (0, in_pad - in_dim)))
    if b_pad != B:
        x_in = jnp.pad(x_in, ((0, b_pad - B), (0, 0)), constant_values=1.0)

    grid = (b_pad // tb,)
    kernel = functools.partial(_nalu_kernel, epsilon=epsilon, out_pad=out_pad)

    def _weight_spec(shape, pipeline_mode):
        if pipeline_mode is None:
            return pl.BlockSpec(shape, lambda i: (0, 0))
        return pl.BlockSpec(shape, lambda i: (0, 0), pipeline_mode=pipeline_mode)

    def _call(weight_pipeline_mode):
        return pl.pallas_call(
            kernel,
            out_shape=jax.ShapeDtypeStruct((b_pad, out_pad), out_dtype),
            grid=grid,
            in_specs=[
                pl.BlockSpec((tb, in_pad), lambda i: (i, 0)),     # x: batch-tiled
                _weight_spec((in_pad, 2 * out_pad), weight_pipeline_mode),
                _weight_spec((in_pad, out_pad), weight_pipeline_mode),
            ],
            out_specs=pl.BlockSpec((tb, out_pad), lambda i: (i, 0)),
            compiler_params=pltpu.CompilerParams(
                dimension_semantics=("parallel",),   # dual-TC sharding on v7x
                vmem_limit_bytes=vmem_limit,
            ),
        )(x_in, wag, w_t)

    if single_buffer_weights:
        try:
            # Constant index_map => double-buffering the weights buys nothing;
            # single-buffer them to halve their VMEM footprint.
            out = jax.block_until_ready(_call(pl.Buffered(1)))
        except Exception:
            out = _call(None)   # fall back to default pipelining
    else:
        out = _call(None)

    if b_pad != B or out_pad != out_dim:
        out = out[:B, :out_dim]
    return out


def nalu_forward(x, W_hat, M_hat, G, W, epsilon=1e-5, *, block_batch=None,
                 use_bf16_matmul=None, out_dtype=jnp.float32):
    """x: (B, input_size); W_hat/M_hat/G/W: (output_size, input_size) (PyTorch layout)."""
    if use_bf16_matmul is None:
        use_bf16_matmul = _default_bf16_wag(_tpu_generation())
    wag_dtype = jnp.bfloat16 if use_bf16_matmul else jnp.float32
    wag, w_t = prepare_nalu_params(W_hat, M_hat, G, W, wag_dtype=wag_dtype)
    return nalu_forward_prepared(x, wag, w_t, G.shape[0], epsilon=epsilon,
                                 block_batch=block_batch, out_dtype=out_dtype)


def nalu_reference(x, W_hat, M_hat, G, W, epsilon=1e-5):
    w_nac = jnp.tanh(W_hat) * jax.nn.sigmoid(M_hat)
    a = x @ w_nac.T
    g = jax.nn.sigmoid(x @ G.T)
    m = jnp.exp(jnp.log(jnp.abs(x) + epsilon) @ W.T)
    return g * a + (1.0 - g) * m


def _xavier_uniform(key, shape):
    # shape = (fan_out, fan_in) to match nn.Parameter(out, in)
    fan_out, fan_in = shape
    bound = (6.0 / (fan_in + fan_out)) ** 0.5
    return jax.random.uniform(key, shape, jnp.float32, -bound, bound)


if __name__ == "__main__":
    # Small but non-degenerate shapes: batch can be tiled, output dim is
    # lane-dense (128), contraction dim (32) gets zero-padded to 128.
    B, IN, OUT = 256, 32, 128
    key = jax.random.PRNGKey(0)
    kx, kg, kw, kwh, kmh = jax.random.split(key, 5)

    x = jax.random.normal(kx, (B, IN), jnp.float32)
    G = _xavier_uniform(kg, (OUT, IN))
    W = _xavier_uniform(kw, (OUT, IN))
    W_hat = _xavier_uniform(kwh, (OUT, IN))
    M_hat = _xavier_uniform(kmh, (OUT, IN))

    ref = nalu_reference(x, W_hat, M_hat, G, W)

    # 1) Strict semantics check: f32 MXU operands everywhere.
    out_f32 = jax.block_until_ready(
        nalu_forward(x, W_hat, M_hat, G, W, use_bf16_matmul=False))
    assert out_f32.shape == (B, OUT)
    assert jnp.allclose(out_f32, ref, atol=1e-4, rtol=1e-4), "f32 mismatch vs. reference"

    # 2) Generation-tuned default (bf16 operands for the NAC/gate matmul on
    #    v6e/v7x): same math, looser tolerance for the bf16 operand rounding.
    out_auto = jax.block_until_ready(nalu_forward(x, W_hat, M_hat, G, W))
    assert out_auto.shape == (B, OUT)
    assert jnp.allclose(out_auto, ref, atol=1e-1, rtol=1e-1), "auto mismatch vs. reference"

    print("KERNEL_OK")
</pallas_src>

<mosaic_0001>
module attributes {stable_mosaic.version = 11 : i64} {
  func.func @_nalu_kernel(%arg0: i32, %arg1: memref<256x128xf32, #tpu.memory_space<vmem>>, %arg2: memref<128x256xf32, #tpu.memory_space<vmem>>, %arg3: memref<128x128xf32, #tpu.memory_space<vmem>>, %arg4: memref<256x128xf32, #tpu.memory_space<vmem>>) attributes {dimension_semantics = [#tpu.dimension_semantics<parallel>], iteration_bounds = array<i64: 1>, scalar_prefetch = 0 : i64, scratch_operands = 0 : i64, tpu.core_type = #tpu.core_type<tc>, window_params = [{transform_indices = @transform_0, window_bounds = array<i64: 256, 128>}, {pipeline_mode = #tpu.pipeline_mode<synchronous>, transform_indices = @transform_1, window_bounds = array<i64: 128, 256>}, {pipeline_mode = #tpu.pipeline_mode<synchronous>, transform_indices = @transform_2, window_bounds = array<i64: 128, 128>}, {transform_indices = @transform_3, window_bounds = array<i64: 256, 128>}]} {
    %c0 = arith.constant 0 : index
    %c0_0 = arith.constant 0 : index
    %0 = vector.load %arg1[%c0, %c0_0] : memref<256x128xf32, #tpu.memory_space<vmem>>, vector<256x128xf32>
    %c0_1 = arith.constant 0 : index
    %c0_2 = arith.constant 0 : index
    %1 = vector.load %arg2[%c0_1, %c0_2] : memref<128x256xf32, #tpu.memory_space<vmem>>, vector<128x256xf32>
    %cst = arith.constant dense<0.000000e+00> : vector<256x256xf32>
    %2 = tpu.matmul %0, %1, %cst {dimension_numbers = #tpu.dot_dimension_numbers<[1], [0], [0], [1], [0, 0, 1, 1], [], []>} : vector<256x128xf32>, vector<128x256xf32>, vector<256x256xf32> -> vector<256x256xf32>
    %3 = vector.extract_strided_slice %2 {offsets = [0, 0], sizes = [256, 128], strides = [1, 1]} : vector<256x256xf32> to vector<256x128xf32>
    %4 = vector.extract_strided_slice %2 {offsets = [0, 128], sizes = [256, 128], strides = [1, 1]} : vector<256x256xf32> to vector<256x128xf32>
    %cst_3 = arith.constant 5.000000e-01 : f32
    %5 = vector.broadcast %cst_3 : f32 to vector<256x128xf32>
    %6 = arith.mulf %5, %4 : vector<256x128xf32>
    %7 = math.tanh %6 : vector<256x128xf32>
    %cst_4 = arith.constant 1.000000e+00 : f32
    %8 = vector.broadcast %cst_4 : f32 to vector<256x128xf32>
    %9 = arith.addf %8, %7 : vector<256x128xf32>
    %cst_5 = arith.constant 5.000000e-01 : f32
    %10 = vector.broadcast %cst_5 : f32 to vector<256x128xf32>
    %11 = arith.mulf %10, %9 : vector<256x128xf32>
    %12 = math.absf %0 : vector<256x128xf32>
    %cst_6 = arith.constant 9.99999974E-6 : f32
    %13 = vector.broadcast %cst_6 : f32 to vector<256x128xf32>
    %14 = arith.addf %12, %13 : vector<256x128xf32>
    %15 = math.log %14 : vector<256x128xf32>
    %c0_7 = arith.constant 0 : index
    %c0_8 = arith.constant 0 : index
    %16 = vector.load %arg3[%c0_7, %c0_8] : memref<128x128xf32, #tpu.memory_space<vmem>>, vector<128x128xf32>
    %cst_9 = arith.constant dense<0.000000e+00> : vector<256x128xf32>
    %17 = tpu.matmul %15, %16, %cst_9 {dimension_numbers = #tpu.dot_dimension_numbers<[1], [0], [0], [1], [0, 0, 1, 1], [], []>} : vector<256x128xf32>, vector<128x128xf32>, vector<256x128xf32> -> vector<256x128xf32>
    %18 = math.exp %17 : vector<256x128xf32>
    %19 = arith.subf %3, %18 : vector<256x128xf32>
    %20 = arith.mulf %11, %19 : vector<256x128xf32>
    %21 = arith.addf %18, %20 : vector<256x128xf32>
    %c0_10 = arith.constant 0 : index
    %c0_11 = arith.constant 0 : index
    %22 = vector.load %arg4[%c0_10, %c0_11] : memref<256x128xf32, #tpu.memory_space<vmem>>, vector<256x128xf32>
    tpu.vector_store %arg4[%c0_10, %c0_11], %21 {strides = array<i32>} : memref<256x128xf32, #tpu.memory_space<vmem>>, vector<256x128xf32>,
    return
  }
  func.func @transform_0(%arg0: i32) -> (i32, i32) {
    %c0_i32 = arith.constant 0 : i32
    %c0_i32_0 = arith.constant 0 : i32
    return %arg0, %c0_i32 : i32, i32
  }
  func.func @transform_1(%arg0: i32) -> (i32, i32) {
    %c0_i32 = arith.constant 0 : i32
    %c0_i32_0 = arith.constant 0 : i32
    %c0_i32_1 = arith.constant 0 : i32
    return %c0_i32, %c0_i32_0 : i32, i32
  }
  func.func @transform_2(%arg0: i32) -> (i32, i32) {
    %c0_i32 = arith.constant 0 : i32
    %c0_i32_0 = arith.constant 0 : i32
    %c0_i32_1 = arith.constant 0 : i32
    return %c0_i32, %c0_i32_0 : i32, i32
  }
  func.func @transform_3(%arg0: i32) -> (i32, i32) {
    %c0_i32 = arith.constant 0 : i32
    %c0_i32_0 = arith.constant 0 : i32
    return %arg0, %c0_i32 : i32, i32
  }
}

module attributes {stable_mosaic.version = 11 : i64} {
  func.func @_nalu_kernel(%arg0: i32, %arg1: memref<256x128xf32, #tpu.memory_space<vmem>>, %arg2: memref<128x256xf32, #tpu.memory_space<vmem>>, %arg3: memref<128x128xf32, #tpu.memory_space<vmem>>, %arg4: memref<256x128xf32, #tpu.memory_space<vmem>>) attributes {dimension_semantics = [#tpu.dimension_semantics<parallel>], iteration_bounds = array<i64: 1>, scalar_prefetch = 0 : i64, scratch_operands = 0 : i64, tpu.core_type = #tpu.core_type<tc>, window_params = [{transform_indices = @transform_0, window_bounds = array<i64: 256, 128>}, {pipeline_mode = #tpu.pipeline_mode<synchronous>, transform_indices = @transform_1, window_bounds = array<i64: 128, 256>}, {pipeline_mode = #tpu.pipeline_mode<synchronous>, transform_indices = @transform_2, window_bounds = array<i64: 128, 128>}, {transform_indices = @transform_3, window_bounds = array<i64: 256, 128>}]} {
    %c0 = arith.constant 0 : index
    %c0_0 = arith.constant 0 : index
    %0 = vector.load %arg1[%c0, %c0_0] : memref<256x128xf32, #tpu.memory_space<vmem>>, vector<256x128xf32>
    %c0_1 = arith.constant 0 : index
    %c0_2 = arith.constant 0 : index
    %1 = vector.load %arg2[%c0_1, %c0_2] : memref<128x256xf32, #tpu.memory_space<vmem>>, vector<128x256xf32>
    %cst = arith.constant dense<0.000000e+00> : vector<256x256xf32>
    %2 = tpu.matmul %0, %1, %cst {dimension_numbers = #tpu.dot_dimension_numbers<[1], [0], [0], [1], [0, 0, 1, 1], [], []>} : vector<256x128xf32>, vector<128x256xf32>, vector<256x256xf32> -> vector<256x256xf32>
    %3 = vector.extract_strided_slice %2 {offsets = [0, 0], sizes = [256, 128], strides = [1, 1]} : vector<256x256xf32> to vector<256x128xf32>
    %4 = vector.extract_strided_slice %2 {offsets = [0, 128], sizes = [256, 128], strides = [1, 1]} : vector<256x256xf32> to vector<256x128xf32>
    %cst_3 = arith.constant 5.000000e-01 : f32
    %5 = vector.broadcast %cst_3 : f32 to vector<256x128xf32>
    %6 = arith.mulf %5, %4 : vector<256x128xf32>
    %7 = math.tanh %6 : vector<256x128xf32>
    %cst_4 = arith.constant 1.000000e+00 : f32
    %8 = vector.broadcast %cst_4 : f32 to vector<256x128xf32>
    %9 = arith.addf %8, %7 : vector<256x128xf32>
    %cst_5 = arith.constant 5.000000e-01 : f32
    %10 = vector.broadcast %cst_5 : f32 to vector<256x128xf32>
    %11 = arith.mulf %10, %9 : vector<256x128xf32>
    %12 = math.absf %0 : vector<256x128xf32>
    %cst_6 = arith.constant 9.99999974E-6 : f32
    %13 = vector.broadcast %cst_6 : f32 to vector<256x128xf32>
    %14 = arith.addf %12, %13 : vector<256x128xf32>
    %15 = math.log %14 : vector<256x128xf32>
    %c0_7 = arith.constant 0 : index
    %c0_8 = arith.constant 0 : index
    %16 = vector.load %arg3[%c0_7, %c0_8] : memref<128x128xf32, #tpu.memory_space<vmem>>, vector<128x128xf32>
    %cst_9 = arith.constant dense<0.000000e+00> : vector<256x128xf32>
    %17 = tpu.matmul %15, %16, %cst_9 {dimension_numbers = #tpu.dot_dimension_numbers<[1], [0], [0], [1], [0, 0, 1, 1], [], []>} : vector<256x128xf32>, vector<128x128xf32>, vector<256x128xf32> -> vector<256x128xf32>
    %18 = math.exp %17 : vector<256x128xf32>
    %19 = arith.subf %3, %18 : vector<256x128xf32>
    %20 = arith.mulf %11, %19 : vector<256x128xf32>
    %21 = arith.addf %18, %20 : vector<256x128xf32>
    %c0_10 = arith.constant 0 : index
    %c0_11 = arith.constant 0 : index
    %22 = vector.load %arg4[%c0_10, %c0_11] : memref<256x128xf32, #tpu.memory_space<vmem>>, vector<256x128xf32>
    tpu.vector_store %arg4[%c0_10, %c0_11], %21 {strides = array<i32>} : memref<256x128xf32, #tpu.memory_space<vmem>>, vector<256x128xf32>,
    return
  }
  func.func @transform_0(%arg0: i32) -> (i32, i32) {
    %c0_i32 = arith.constant 0 : i32
    %c0_i32_0 = arith.constant 0 : i32
    return %arg0, %c0_i32 : i32, i32
  }
  func.func @transform_1(%arg0: i32) -> (i32, i32) {
    %c0_i32 = arith.constant 0 : i32
    %c0_i32_0 = arith.constant 0 : i32
    %c0_i32_1 = arith.constant 0 : i32
    return %c0_i32, %c0_i32_0 : i32, i32
  }
  func.func @transform_2(%arg0: i32) -> (i32, i32) {
    %c0_i32 = arith.constant 0 : i32
    %c0_i32_0 = arith.constant 0 : i32
    %c0_i32_1 = arith.constant 0 : i32
    return %c0_i32, %c0_i32_0 : i32, i32
  }
  func.func @transform_3(%arg0: i32) -> (i32, i32) {
    %c0_i32 = arith.constant 0 : i32
    %c0_i32_0 = arith.constant 0 : i32
    return %arg0, %c0_i32 : i32, i32
  }
}

</mosaic_0001>

<bundles_post_ra>
// kernel: tpu_custom_call.1
= control target key start
LH: loop header
LB: loop body
LE: loop exit
PB: predicated region body
PF: predicated region fallthrough
CT: control target
= control target key end

     0   :  { %8 = vsyncpa [#allocation3], 0  ;;  %s1614_s0 = inlined_call_operand.hbm [shape: f32[256,128], index: 0, kind: input, shape index: {}]   ;;  %s1615_s1 = inlined_call_operand.hbm [shape: f32[128,256], index: 1, kind: input, shape index: {}]   ;;  %s1616_s2 = inlined_call_operand.hbm [shape: f32[128,128], index: 2, kind: input, shape index: {}]   ;;  %s1617_s3 = inlined_call_operand.hbm [shape: f32[256,128], index: 3, kind: output, shape index: {}]  }
   0x1   :  { %9 = vsyncpa [#allocation6], 0  ;;  %s28_s14 = sshll.u32 %s1615_s1, 4  ;;  %s29_s14 = int_to_ptr.hbm [resolvable:$true] %s28_s14 }
   0x2   :  { %10 = vsyncpa [#allocation4], 0  ;;  %s1299_s15 = smov [#allocation5]   ;;  %s15_s19 = sshll.u32 %s1614_s0, 4  ;;  %s16_s19 = int_to_ptr.hbm [resolvable:$true] %s15_s19 }
   0x3   :  { %s30_s16 = sshll.u32 %s1299_s15, 4  ;;  %s1300_s20 = smov 256   ;;  %s31_s16 = int_to_ptr.vmem [resolvable:$true] %s30_s16 }
   0x4   :  { %s1301_s21 = smov 16   ;;  %s1302_s22 = smov [#allocation2]  }
   0x5   :  { %36 = dma.hbm_to_vmem [thread:$0]  %s29_s14, 4096, %s31_s16, [#allocation6], %s1300_s20, %s1300_s20, %s1301_s21  }
   0x6   :  { %s17_s23 = sshll.u32 %s1302_s22, 4  ;;  %s1303_s24 = smov 128   ;;  %s18_s23 = int_to_ptr.vmem [resolvable:$true] %s17_s23 }
   0x7   :  { %s1304_s25 = smov 8   ;;  %s41_s27 = sshll.u32 %s1616_s2, 4  ;;  %s42_s27 = int_to_ptr.hbm [resolvable:$true] %s41_s27 }
   0x8   :  { %23 = dma.hbm_to_vmem [thread:$0]  %s16_s19, 4096, %s18_s23, [#allocation3], %s1303_s24, %s1303_s24, %s1304_s25  }
   0x9   :  { %s1305_s28 = smov [#allocation7]  }
   0xa   :  { %s43_s0 = sshll.u32 %s1305_s28, 4  ;;  %s44_s0 = int_to_ptr.vmem [resolvable:$true] %s43_s0 }
   0xb   :  { %49 = dma.hbm_to_vmem [thread:$0]  %s42_s27, 2048, %s44_s0, [#allocation6], %s1303_s24, %s1303_s24, %s1304_s25  }
   0xc   :  { %1293 = dma.done.wait [#allocation3], 4096  }
   0xd   :  { %1294 = vsyncadd [#allocation3], 4294963200 }
   0xe   :  { %1295 = dma.done.wait [#allocation6], 6144  }
   0xf   :  { %1296 = vsyncadd [#allocation6], 4294961152  ;;  %v124_v0 = vld [vmem:[#allocation5 + $0xf0] sm:$0xff]  ;;  %v1342_v1 = vld [vmem:[#allocation7 + $0x78] sm:$0xff]  ;;  %s1306_s2 = smov [#allocation8]   ;;  %s935_s5 = sshll.u32 %s1617_s3, 4  ;;  %s936_s5 = int_to_ptr.hbm [resolvable:$true] %s935_s5 }
  0x10   :  { %v122_v2 = vld [vmem:[#allocation5 + $0xe0] sm:$0xff]  ;;  %949 = vmatpush.msra.mxu3 %v124_v0  ;;  %624 = vmatpush.msra.mxu2 %v1342_v1  ;;  %v1345_v3 = vld [vmem:[#allocation7 + $0x70] sm:$0xff]  ;;  %v1347_v4 = vld [vmem:[#allocation5 + $0xf8] sm:$0xff]  ;;  %s933_s29 = sshll.u32 %s1306_s2, 4  ;;  %s934_s29 = int_to_ptr.vmem [resolvable:$true] %s933_s29 }
  0x11   :  { %v120_v5 = vld [vmem:[#allocation5 + $0xd0] sm:$0xff]  ;;  %239 = vmatpush.msra.mxu1 %v1347_v4  ;;  %v1350_v6 = vld [vmem:[#allocation7 + $0x68] sm:$0xff]  ;;  %126 = vmatpush.msra.mxu0 %v124_v0  ;;  %v1355_v8 = vld [vmem:[#allocation5 + $0xd8] sm:$0xff] }
  0x12   :  { %v1352_v7 = vld [vmem:[#allocation5 + $0xe8] sm:$0xff]  ;;  %950 = vmatpush.msra.mxu3 %v122_v2  ;;  %625 = vmatpush.msra.mxu2 %v1345_v3  ;;  %v118_v9 = vld [vmem:[#allocation5 + $0xc0] sm:$0xff]  ;;  %v116_v12 = vld [vmem:[#allocation5 + $0xb0] sm:$0xff] }
  0x13   :  { %240 = vmatpush.msra.mxu1 %v1352_v7  ;;  %v1358_v10 = vld [vmem:[#allocation7 + $0x60] sm:$0xff]  ;;  %127 = vmatpush.msra.mxu0 %v122_v2  ;;  %v1361_v11 = vld [vmem:[#allocation5 + $0xc8] sm:$0xff]  ;;  %v1364_v13 = vld [vmem:[#allocation7 + $0x58] sm:$0xff] }
  0x14   :  { %951 = vmatpush.msra.mxu3 %v120_v5  ;;  %626 = vmatpush.msra.mxu2 %v1350_v6  ;;  %v1367_v14 = vld [vmem:[#allocation5 + $0xb8] sm:$0xff]  ;;  %v114_v15 = vld [vmem:[#allocation5 + $0xa0] sm:$0xff]  ;;  %v1370_v16 = vld [vmem:[#allocation7 + $0x50] sm:$0xff] }
  0x15   :  { %241 = vmatpush.msra.mxu1 %v1355_v8  ;;  %128 = vmatpush.msra.mxu0 %v120_v5  ;;  %v1373_v17 = vld [vmem:[#allocation5 + $0xa8] sm:$0xff]  ;;  %v112_v18 = vld [vmem:[#allocation5 + $0x90] sm:$0xff]  ;;  %v1379_v20 = vld [vmem:[#allocation5 + $0x98] sm:$0xff] }
  0x16   :  { %952 = vmatpush.msra.mxu3 %v118_v9  ;;  %627 = vmatpush.msra.mxu2 %v1358_v10  ;;  %v1376_v19 = vld [vmem:[#allocation7 + $0x48] sm:$0xff]  ;;  %v110_v21 = vld [vmem:[#allocation5 + $0x80] sm:$0xff]  ;;  %v108_v24 = vld [vmem:[#allocation5 + $0x70] sm:$0xff] }
  0x17   :  { %242 = vmatpush.msra.mxu1 %v1361_v11  ;;  %129 = vmatpush.msra.mxu0 %v118_v9  ;;  %v1382_v22 = vld [vmem:[#allocation7 + $0x40] sm:$0xff]  ;;  %v1385_v23 = vld [vmem:[#allocation5 + $0x88] sm:$0xff]  ;;  %v1388_v25 = vld [vmem:[#allocation7 + $0x38] sm:$0xff] }
  0x18   :  { %953 = vmatpush.msra.mxu3 %v116_v12  ;;  %628 = vmatpush.msra.mxu2 %v1364_v13  ;;  %v1391_v26 = vld [vmem:[#allocation5 + $0x78] sm:$0xff]  ;;  %v1393_v27 = vld [vmem:[#allocation2] sm:$0xff]  ;;  %v1396_v29 = vld [vmem:[#allocation7 + $0x30] sm:$0xff] }
  0x19   :  { %243 = vmatpush.msra.mxu1 %v1367_v14  ;;  %130 = vmatpush.msra.mxu0 %v116_v12  ;;  %v106_v28 = vld [vmem:[#allocation5 + $0x60] sm:$0xff]  ;;  %v480_v30 = vand.u32 2147483647, %v1393_v27  ;;  %v1400_v31 = vld [vmem:[#allocation5 + $0x68] sm:$0xff]  ;;  %v104_v33 = vld [vmem:[#allocation5 + $0x50] sm:$0xff] }
  0x1a   :  { %954 = vmatpush.msra.mxu3 %v114_v15  ;;  %629 = vmatpush.msra.mxu2 %v1370_v16  ;;  %v1402_v32 = vld [vmem:[#allocation2 + $0x8] sm:$0xff]  ;;  %v1408_v36 = vld [vmem:[#allocation5 + $0x58] sm:$0xff]  ;;  %v102_v38 = vld [vmem:[#allocation5 + $0x40] sm:$0xff] }
  0x1b   :  { %244 = vmatpush.msra.mxu1 %v1373_v17  ;;  %131 = vmatpush.msra.mxu0 %v114_v15  ;;  %v1405_v34 = vld [vmem:[#allocation7 + $0x28] sm:$0xff]  ;;  %v512_v35 = vadd.f32 1e-05, %v480_v30  ;;  %v481_v37 = vand.u32 2147483647, %v1402_v32  ;;  %v1412_v39 = vld [vmem:[#allocation7 + $0x20] sm:$0xff] }
  0x1c   :  { %955 = vmatpush.msra.mxu3 %v112_v18  ;;  %630 = vmatpush.msra.mxu2 %v1376_v19  ;;  %v1415_v40 = vld [vmem:[#allocation5 + $0x48] sm:$0xff]  ;;  %v100_v41 = vld [vmem:[#allocation5 + $0x30] sm:$0xff]  ;;  %v1418_v42 = vld [vmem:[#allocation7 + $0x18] sm:$0xff] }
  0x1d   :  { %245 = vmatpush.msra.mxu1 %v1379_v20  ;;  %132 = vmatpush.msra.mxu0 %v112_v18  ;;  %1005 = vlog2.f32 %v512_v35  ;;  %v1421_v43 = vld [vmem:[#allocation5 + $0x38] sm:$0xff]  ;;  %v513_v44 = vadd.f32 1e-05, %v481_v37  ;;  %v98_v45 = vld [vmem:[#allocation5 + $0x20] sm:$0xff]  ;;  %v1424_v46 = vld [vmem:[#allocation7 + $0x10] sm:$0xff] }
  0x1e   :  { %956 = vmatpush.msra.mxu3 %v110_v21  ;;  %631 = vmatpush.msra.mxu2 %v1382_v22  ;;  %v1426_v47 = vld [vmem:[#allocation2 + $0x10] sm:$0xff]  ;;  %v1429_v48 = vld [vmem:[#allocation5 + $0x28] sm:$0xff]  ;;  %v1435_v52 = vld [vmem:[#allocation5 + $0x18] sm:$0xff] }
  0x1f   :  { %246 = vmatpush.msra.mxu1 %v1385_v23  ;;  %133 = vmatpush.msra.mxu0 %v110_v21  ;;  %v96_v49 = vld [vmem:[#allocation5 + $0x10] sm:$0xff]  ;;  %v1432_v50 = vld [vmem:[#allocation7 + $0x8] sm:$0xff]  ;;  %1007 = vlog2.f32 %v513_v44  ;;  %v482_v53 = vand.u32 2147483647, %v1426_v47  ;;  %v94_v54 = vld [vmem:[#allocation5] sm:$0xff] }
  0x20   :  { %957 = vmatpush.msra.mxu3 %v108_v24  ;;  %632 = vmatpush.msra.mxu2 %v1388_v25  ;;  %v1439_v55 = vld [vmem:[#allocation7] sm:$0xff]  ;;  %v1445_v58 = vld [vmem:[#allocation5 + $0x8] sm:$0xff]  ;;  %v65_v60 = vld [vmem:[#allocation2 + $0x18] sm:$0xff] }
  0x21   :  { %247 = vmatpush.msra.mxu1 %v1391_v26  ;;  %134 = vmatpush.msra.mxu0 %v108_v24  ;;  %v1442_v57 = vld [vmem:[#allocation2 + $0xc0] sm:$0xff]  ;;  %v514_v59 = vadd.f32 1e-05, %v482_v53  ;;  %v483_v62 = vand.u32 2147483647, %v65_v60  ;;  %v1454_v0 = vld [vmem:[#allocation2 + $0xc8] sm:$0xff] }
  0x22   :  { %958 = vmatpush.msra.mxu3 %v106_v28  ;;  %633 = vmatpush.msra.mxu2 %v1396_v29  ;;  %v67_v12 = vld [vmem:[#allocation2 + $0x28] sm:$0xff]  ;;  %v1472_v18 = vld [vmem:[#allocation2 + $0xd8] sm:$0xff]  ;;  %v68_v21 = vld [vmem:[#allocation2 + $0x30] sm:$0xff] }
  0x23   :  { %248 = vmatpush.msra.mxu1 %v1400_v31  ;;  %135 = vmatpush.msra.mxu0 %v106_v28  ;;  %v1006_v51 = vpop.eup %1005  ;;  %1009 = vlog2.f32 %v514_v59  ;;  %v515_v2 = vadd.f32 1e-05, %v483_v62  ;;  %v485_v15 = vand.u32 2147483647, %v67_v12  ;;  %v486_v24 = vand.u32 2147483647, %v68_v21 }
  0x24   :  { %959 = vmatpush.msra.mxu3 %v104_v33  ;;  %634 = vmatpush.msra.mxu2 %v1405_v34  ;;  %v545_v56 = vmul.f32 0.6931472, %v1006_v51  ;;  %v69_v30 = vld [vmem:[#allocation2 + $0x38] sm:$0xff]  ;;  %v1486_v35 = vld [vmem:[#allocation2 + $0xe8] sm:$0xff]  ;;  %v70_v37 = vld [vmem:[#allocation2 + $0x40] sm:$0xff] }
  0x25   :  { %249 = vmatpush.msra.mxu1 %v1408_v36  ;;  %136 = vmatpush.msra.mxu0 %v104_v33  ;;  %v1008_v61 = vpop.eup %1007  ;;  %1011 = vlog2.f32 %v515_v2  ;;  %v518_v28 = vadd.f32 1e-05, %v486_v24  ;;  %v75_v53 = vld [vmem:[#allocation2 + $0x68] sm:$0xff]  ;;  %v76_v59 = vld [vmem:[#allocation2 + $0x70] sm:$0xff]  ;;  %v77_v2 = vld [vmem:[#allocation2 + $0x78] sm:$0xff] }
  0x26   :  { %960 = vmatpush.msra.mxu3 %v102_v38  ;;  %635 = vmatpush.msra.mxu2 %v1412_v39  ;;  %v547_v63 = vmul.f32 0.6931472, %v1008_v61  ;;  %v494_v61 = vand.u32 2147483647, %v76_v59 }
  0x27   :  { %250 = vmatpush.msra.mxu1 %v1415_v40  ;;  %137 = vmatpush.msra.mxu0 %v102_v38 }
  0x28   :  { %961 = vmatpush.msra.mxu3 %v100_v41  ;;  %636 = vmatpush.msra.mxu2 %v1418_v42 }
  0x29   :  { %251 = vmatpush.msra.mxu1 %v1421_v43  ;;  %138 = vmatpush.msra.mxu0 %v100_v41  ;;  %v1010_v5 = vpop.eup %1009 }
  0x2a   :  { %962 = vmatpush.msra.mxu3 %v98_v45  ;;  %637 = vmatpush.msra.mxu2 %v1424_v46  ;;  %v549_v9 = vmul.f32 0.6931472, %v1010_v5  ;;  %v495_v5 = vand.u32 2147483647, %v77_v2 }
  0x2b   :  { %252 = vmatpush.msra.mxu1 %v1429_v48  ;;  %139 = vmatpush.msra.mxu0 %v98_v45 }
  0x2c   :  { %963 = vmatpush.msra.mxu3 %v96_v49  ;;  %638 = vmatpush.msra.mxu2 %v1432_v50 }
  0x2d   :  { %253 = vmatpush.msra.mxu1 %v1435_v52  ;;  %140 = vmatpush.msra.mxu0 %v96_v49 }
  0x2e   :  { %964 = vmatpush.msra.mxu3 %v94_v54  ;;  %639 = vmatpush.msra.mxu2 %v1439_v55 }
  0x2f   :  { %214 = vmatmul.f32.vlgmr.msra.gmra.mxu3 %v1442_v57  ;;  %640 = vmatmul.f32.vlgmr.msra.gmra.mxu2 %v545_v56 }
  0x30   :  { %965 = vmatpush.msrb.mxu3 %v1347_v4  ;;  %254 = vmatpush.msra.mxu1 %v1445_v58  ;;  %v66_v4 = vld [vmem:[#allocation2 + $0x20] sm:$0xff] }
  0x31   :  { %255 = vmatmul.f32.vlgmr.msra.gmra.mxu1 %v1393_v27  ;;  %141 = vmatpush.msra.mxu0 %v94_v54 }
  0x32   :  { %966 = vmatpush.msrb.mxu3 %v1352_v7  ;;  %142 = vmatmul.f32.vlgmr.msra.gmra.mxu0 %v1393_v27  ;;  %v484_v7 = vand.u32 2147483647, %v66_v4  ;;  %v1479_v27 = vld [vmem:[#allocation2 + $0xe0] sm:$0xff] }
  0x34   :  { %967 = vmatpush.msrb.mxu3 %v1355_v8  ;;  %v1463_v8 = vld [vmem:[#allocation2 + $0xd0] sm:$0xff] }
  0x36   :  { %968 = vmatpush.msrb.mxu3 %v1361_v11  ;;  %v516_v11 = vadd.f32 1e-05, %v484_v7 }
  0x37   :  { %217 = vmatmul.f32.gmra.mxu3 %v1454_v0  ;;  %643 = vmatmul.f32.gmra.mxu2 %v547_v63  ;;  %v526_v63 = vadd.f32 1e-05, %v494_v61 }
  0x38   :  { %969 = vmatpush.msrb.mxu3 %v1367_v14  ;;  %v1012_v14 = vpop.eup %1011  ;;  %1013 = vlog2.f32 %v516_v11  ;;  %v78_v11 = vld [vmem:[#allocation2 + $0x80] sm:$0xff] }
  0x39   :  { %258 = vmatmul.f32.gmra.mxu1 %v1402_v32 }
  0x3a   :  { %970 = vmatpush.msrb.mxu3 %v1373_v17  ;;  %145 = vmatmul.f32.gmra.mxu0 %v1402_v32  ;;  %v551_v17 = vmul.f32 0.6931472, %v1012_v14  ;;  %v487_v32 = vand.u32 2147483647, %v69_v30  ;;  %v504_v14 = vand.u32 2147483647, %v1442_v57 }
  0x3c   :  { %971 = vmatpush.msrb.mxu3 %v1379_v20  ;;  %v517_v20 = vadd.f32 1e-05, %v485_v15  ;;  %v496_v15 = vand.u32 2147483647, %v78_v11 }
  0x3e   :  { %972 = vmatpush.msrb.mxu3 %v1385_v23  ;;  %v1014_v23 = vpop.eup %1013  ;;  %1015 = vlog2.f32 %v517_v20  ;;  %v536_v20 = vadd.f32 1e-05, %v504_v14 }
  0x3f   :  { %220 = vmatmul.f32.gmra.mxu3 %v1463_v8  ;;  %646 = vmatmul.f32.gmra.mxu2 %v549_v9  ;;  %1017 = vlog2.f32 %v518_v28  ;;  %v527_v9 = vadd.f32 1e-05, %v495_v5  ;;  %v505_v28 = vand.u32 2147483647, %v1454_v0  ;;  %v1540_v5 = vld [vmem:[#allocation2 + $0xa8] sm:$0xff] }
  0x40   :  { %973 = vmatpush.msrb.mxu3 %v1391_v26  ;;  %v553_v26 = vmul.f32 0.6931472, %v1014_v23  ;;  %v1516_v23 = vld [vmem:[#allocation2 + $0x88] sm:$0xff] }
  0x41   :  { %261 = vmatmul.f32.gmra.mxu1 %v1426_v47 }
  0x42   :  { %148 = vmatmul.f32.gmra.mxu0 %v1426_v47  ;;  %974 = vmatpush.msrb.mxu3 %v1400_v31 }
  0x44   :  { %975 = vmatpush.msrb.mxu3 %v1408_v36  ;;  %v1016_v31 = vpop.eup %1015  ;;  %v519_v36 = vadd.f32 1e-05, %v487_v32  ;;  %v537_v32 = vadd.f32 1e-05, %v505_v28 }
  0x45   :  { %v555_v33 = vmul.f32 0.6931472, %v1016_v31  ;;  %v1018_v38 = vpop.eup %1017  ;;  %v1521_v31 = vld [vmem:[#allocation2 + $0x90] sm:$0xff] }
  0x46   :  { %976 = vmatpush.msrb.mxu3 %v1415_v40  ;;  %1019 = vlog2.f32 %v519_v36  ;;  %v1493_v40 = vld [vmem:[#allocation2 + $0xf0] sm:$0xff] }
  0x47   :  { %223 = vmatmul.f32.gmra.mxu3 %v1472_v18  ;;  %649 = vmatmul.f32.gmra.mxu2 %v551_v17 }
  0x48   :  { %977 = vmatpush.msrb.mxu3 %v1421_v43  ;;  %v1500_v43 = vld [vmem:[#allocation2 + $0xf8] sm:$0xff] }
  0x49   :  { %264 = vmatmul.f32.gmra.mxu1 %v65_v60 }
  0x4a   :  { %151 = vmatmul.f32.gmra.mxu0 %v65_v60  ;;  %978 = vmatpush.msrb.mxu3 %v1429_v48 }
  0x4c   :  { %979 = vmatpush.msrb.mxu3 %v1435_v52  ;;  %v1020_v41 = vpop.eup %1019 }
  0x4e   :  { %980 = vmatpush.msrb.mxu3 %v1445_v58 }
  0x4f   :  { %226 = vmatmul.f32.gmra.mxu3 %v1479_v27  ;;  %652 = vmatmul.f32.gmra.mxu2 %v553_v26  ;;  %v497_v26 = vand.u32 2147483647, %v1516_v23 }
  0x50   :  { %981 = vmatpush.msra.mxu3 %v1342_v1  ;;  %v488_v1 = vand.u32 2147483647, %v70_v37 }
  0x51   :  { %267 = vmatmul.f32.gmra.mxu1 %v66_v4 }
  0x52   :  { %154 = vmatmul.f32.gmra.mxu0 %v66_v4  ;;  %982 = vmatpush.msra.mxu3 %v1345_v3  ;;  %v557_v3 = vmul.f32 0.6931472, %v1018_v38  ;;  %v506_v38 = vand.u32 2147483647, %v1463_v8 }
  0x54   :  { %983 = vmatpush.msra.mxu3 %v1350_v6  ;;  %v520_v6 = vadd.f32 1e-05, %v488_v1 }
  0x56   :  { %984 = vmatpush.msra.mxu3 %v1358_v10  ;;  %v71_v10 = vld [vmem:[#allocation2 + $0x48] sm:$0xff]  ;;  %1021 = vlog2.f32 %v520_v6  ;;  %v1526_v6 = vld [vmem:[#allocation2 + $0x98] sm:$0xff] }
  0x57   :  { %229 = vmatmul.f32.gmra.mxu3 %v1486_v35  ;;  %655 = vmatmul.f32.gmra.mxu2 %v555_v33 }
  0x58   :  { %985 = vmatpush.msra.mxu3 %v1364_v13  ;;  %v489_v13 = vand.u32 2147483647, %v71_v10 }
  0x59   :  { %270 = vmatmul.f32.gmra.mxu1 %v67_v12 }
  0x5a   :  { %157 = vmatmul.f32.gmra.mxu0 %v67_v12  ;;  %986 = vmatpush.msra.mxu3 %v1370_v16  ;;  %v559_v16 = vmul.f32 0.6931472, %v1020_v41  ;;  %v538_v41 = vadd.f32 1e-05, %v506_v38 }
  0x5c   :  { %987 = vmatpush.msra.mxu3 %v1376_v19  ;;  %v521_v19 = vadd.f32 1e-05, %v489_v13  ;;  %v1022_v44 = vpop.eup %1021 }
  0x5e   :  { %988 = vmatpush.msra.mxu3 %v1382_v22  ;;  %v72_v22 = vld [vmem:[#allocation2 + $0x50] sm:$0xff]  ;;  %1023 = vlog2.f32 %v521_v19 }
  0x5f   :  { %232 = vmatmul.f32.gmra.mxu3 %v1493_v40  ;;  %658 = vmatmul.f32.gmra.mxu2 %v557_v3 }
  0x60   :  { %989 = vmatpush.msra.mxu3 %v1388_v25  ;;  %v490_v25 = vand.u32 2147483647, %v72_v22 }
  0x61   :  { %273 = vmatmul.f32.gmra.mxu1 %v68_v21 }
  0x62   :  { %160 = vmatmul.f32.gmra.mxu0 %v68_v21  ;;  %990 = vmatpush.msra.mxu3 %v1396_v29  ;;  %v561_v29 = vmul.f32 0.6931472, %v1022_v44  ;;  %v528_v21 = vadd.f32 1e-05, %v496_v15  ;;  %v499_v44 = vand.u32 2147483647, %v1526_v6 }
  0x64   :  { %991 = vmatpush.msra.mxu3 %v1405_v34  ;;  %v522_v34 = vadd.f32 1e-05, %v490_v25  ;;  %v1024_v45 = vpop.eup %1023 }
  0x65   :  { %v563_v47 = vmul.f32 0.6931472, %v1024_v45 }
  0x66   :  { %992 = vmatpush.msra.mxu3 %v1412_v39  ;;  %v73_v39 = vld [vmem:[#allocation2 + $0x58] sm:$0xff]  ;;  %1025 = vlog2.f32 %v522_v34 }
  0x67   :  { %235 = vmatmul.f32.gmra.mxu3 %v1500_v43  ;;  %661 = vmatmul.f32.gmra.mxu2 %v559_v16 }
  0x68   :  { %993 = vmatpush.msra.mxu3 %v1418_v42  ;;  %v491_v42 = vand.u32 2147483647, %v73_v39 }
  0x69   :  { %276 = vmatmul.f32.gmra.mxu1 %v69_v30 }
  0x6a   :  { %163 = vmatmul.f32.gmra.mxu0 %v69_v30  ;;  %994 = vmatpush.msra.mxu3 %v1424_v46  ;;  %v523_v48 = vadd.f32 1e-05, %v491_v42  ;;  %v74_v46 = vld [vmem:[#allocation2 + $0x60] sm:$0xff]  ;;  %v529_v30 = vadd.f32 1e-05, %v497_v26 }
  0x6b   :  { %v531_v42 = vadd.f32 1e-05, %v499_v44 }
  0x6c   :  { %995 = vmatpush.msra.mxu3 %v1432_v50  ;;  %v1026_v49 = vpop.eup %1025  ;;  %1027 = vlog2.f32 %v523_v48  ;;  %v492_v50 = vand.u32 2147483647, %v74_v46 }
  0x6d   :  { %v565_v51 = vmul.f32 0.6931472, %v1026_v49 }
  0x6e   :  { %996 = vmatpush.msra.mxu3 %v1439_v55  ;;  %v524_v52 = vadd.f32 1e-05, %v492_v50  ;;  %v493_v55 = vand.u32 2147483647, %v75_v53 }
  0x6f   :  { %327 = vmatmul.f32.vlgmr.msrb.gmra.mxu3 %v1442_v57  ;;  %664 = vmatmul.f32.gmra.mxu2 %v561_v29 }
  0x70   :  { %1029 = vlog2.f32 %v524_v52  ;;  %v525_v58 = vadd.f32 1e-05, %v493_v55  ;;  %v508_v55 = vand.u32 2147483647, %v1479_v27 }
  0x71   :  { %279 = vmatmul.f32.gmra.mxu1 %v70_v37 }
  0x72   :  { %166 = vmatmul.f32.gmra.mxu0 %v70_v37  ;;  %v1028_v54 = vpop.eup %1027  ;;  %1031 = vlog2.f32 %v525_v58  ;;  %v498_v37 = vand.u32 2147483647, %v1521_v31 }
  0x73   :  { %v567_v56 = vmul.f32 0.6931472, %v1028_v54  ;;  %1033 = vlog2.f32 %v526_v63 }
  0x74   :  { %1035 = vlog2.f32 %v527_v9  ;;  %v530_v3 = vadd.f32 1e-05, %v498_v37 }
  0x75   :  { %1037 = vlog2.f32 %v536_v20 }
  0x76   :  { %v1030_v60 = vpop.eup %1029  ;;  %1039 = vlog2.f32 %v528_v21 }
  0x77   :  { %330 = vmatmul.f32.gmra.mxu3 %v1454_v0  ;;  %667 = vmatmul.f32.gmra.mxu2 %v563_v47  ;;  %v569_v62 = vmul.f32 0.6931472, %v1030_v60  ;;  %1041 = vlog2.f32 %v529_v30  ;;  %v1532_v47 = vld [vmem:[#allocation2 + $0xa0] sm:$0xff] }
  0x78   :  { %v1032_v4 = vpop.eup %1031  ;;  %1043 = vlog2.f32 %v537_v32  ;;  %v500_v54 = vand.u32 2147483647, %v1532_v47 }
  0x79   :  { %282 = vmatmul.f32.gmra.mxu1 %v71_v10  ;;  %v571_v7 = vmul.f32 0.6931472, %v1032_v4  ;;  %v1034_v12 = vpop.eup %1033  ;;  %1045 = vlog2.f32 %v530_v3 }
  0x7a   :  { %169 = vmatmul.f32.gmra.mxu0 %v71_v10  ;;  %v573_v17 = vmul.f32 0.6931472, %v1034_v12  ;;  %v1036_v24 = vpop.eup %1035  ;;  %v532_v4 = vadd.f32 1e-05, %v500_v54 }
  0x7b   :  { %v575_v57 = vmul.f32 0.6931472, %v1036_v24  ;;  %v1038_v33 = vpop.eup %1037  ;;  %v509_v24 = vand.u32 2147483647, %v1486_v35 }
  0x7c   :  { %v1040_v36 = vpop.eup %1039  ;;  %v593_v0 = vmul.f32 0.6931472, %v1038_v33 }
  0x7d   :  { %v577_v1 = vmul.f32 0.6931472, %v1040_v36  ;;  %v1042_v13 = vpop.eup %1041 }
  0x7f   :  { %333 = vmatmul.f32.gmra.mxu3 %v1463_v8  ;;  %670 = vmatmul.f32.gmra.mxu2 %v565_v51  ;;  %v507_v8 = vand.u32 2147483647, %v1472_v18 }
  0x81   :  { %285 = vmatmul.f32.gmra.mxu1 %v72_v22  ;;  %v539_v49 = vadd.f32 1e-05, %v507_v8  ;;  %v510_v8 = vand.u32 2147483647, %v1493_v40 }
  0x82   :  { %172 = vmatmul.f32.gmra.mxu0 %v72_v22  ;;  %v1044_v22 = vpop.eup %1043 }
  0x83   :  { %v595_v45 = vmul.f32 0.6931472, %v1044_v22  ;;  %v1046_v48 = vpop.eup %1045 }
  0x87   :  { %336 = vmatmul.f32.gmra.mxu3 %v1472_v18  ;;  %673 = vmatmul.f32.gmra.mxu2 %v567_v56 }
  0x89   :  { %288 = vmatmul.f32.gmra.mxu1 %v73_v39 }
  0x8a   :  { %175 = vmatmul.f32.gmra.mxu0 %v73_v39  ;;  %v579_v39 = vmul.f32 0.6931472, %v1042_v13 }
  0x8f   :  { %339 = vmatmul.f32.gmra.mxu3 %v1479_v27  ;;  %676 = vmatmul.f32.gmra.mxu2 %v569_v62  ;;  %v581_v62 = vmul.f32 0.6931472, %v1046_v48  ;;  %v540_v27 = vadd.f32 1e-05, %v508_v55 }
  0x91   :  { %291 = vmatmul.f32.gmra.mxu1 %v74_v46 }
  0x92   :  { %178 = vmatmul.f32.gmra.mxu0 %v74_v46 }
  0x97   :  { %342 = vmatmul.f32.gmra.mxu3 %v1486_v35  ;;  %679 = vmatmul.f32.gmra.mxu2 %v571_v7 }
  0x99   :  { %294 = vmatmul.f32.gmra.mxu1 %v75_v53 }
  0x9a   :  { %181 = vmatmul.f32.gmra.mxu0 %v75_v53 }
  0x9f   :  { %345 = vmatmul.f32.gmra.mxu3 %v1493_v40  ;;  %682 = vmatmul.f32.gmra.mxu2 %v573_v17 }
  0xa1   :  { %297 = vmatmul.f32.gmra.mxu1 %v76_v59 }
  0xa2   :  { %184 = vmatmul.f32.gmra.mxu0 %v76_v59 }
  0xa7   :  { %348 = vmatmul.f32.gmra.mxu3 %v1500_v43  ;;  %685 = vmatmul.f32.gmra.mxu2 %v575_v57 }
  0xa9   :  { %300 = vmatmul.f32.gmra.mxu1 %v77_v2 }
  0xaa   :  { %187 = vmatmul.f32.gmra.mxu0 %v77_v2 }
  0xae   :  { %v256_v10 = vpop.f32.mrf.mxu1 }
  0xaf   :  { %688 = vmatmul.f32.gmra.mxu2 %v577_v1  ;;  %712 = vmatmul.f32.vlgmr.msra.gmra.mxu3 %v593_v0  ;;  %v352_v16 = vmul.f32 0.5, %v256_v10  ;;  %v143_v19 = vpop.f32.mrf.mxu0  ;;  %v1548_v0 = vld [vmem:[#allocation2 + $0xb0] sm:$0xff]  ;;  %v541_v10 = vadd.f32 1e-05, %v509_v24 }
  0xb0   :  { %v502_v44 = vand.u32 2147483647, %v1548_v0 }
  0xb1   :  { %1047 = vtanh.f32 %v352_v16  ;;  %303 = vmatmul.f32.gmra.mxu1 %v78_v11 }
  0xb2   :  { %v1530_v25 = vpop.f32.mrf.mxu3  ;;  %v641_v29 = vpop.f32.mrf.mxu2  ;;  %190 = vmatmul.f32.gmra.mxu0 %v78_v11  ;;  %1049 = vlog2.f32 %v538_v41 }
  0xb3   :  { %v737_v34 = vmul.f32 1.442695, %v641_v29 }
  0xb5   :  { %1051 = vpow2.f32 %v737_v34 }
  0xb6   :  { %v259_v46 = vpop.f32.mrf.mxu1  ;;  %1053 = vlog2.f32 %v531_v42 }
  0xb7   :  { %v1048_v50 = vpop.eup %1047  ;;  %691 = vmatmul.f32.gmra.mxu2 %v579_v39  ;;  %715 = vmatmul.f32.gmra.mxu3 %v595_v45  ;;  %v353_v51 = vmul.f32 0.5, %v259_v46  ;;  %v146_v18 = vpop.f32.mrf.mxu0 }
  0xb8   :  { %v1050_v52 = vpop.eup %1049  ;;  %v416_v53 = vadd.f32 1.0, %v1048_v50  ;;  %v534_v50 = vadd.f32 1e-05, %v502_v44 }
  0xb9   :  { %1055 = vtanh.f32 %v353_v51  ;;  %306 = vmatmul.f32.gmra.mxu1 %v1516_v23  ;;  %v597_v63 = vmul.f32 0.6931472, %v1050_v52  ;;  %v1556_v51 = vld [vmem:[#allocation2 + $0xb8] sm:$0xff] }
  0xba   :  { %v448_v56 = vmul.f32 0.5, %v416_v53  ;;  %v1537_v58 = vpop.f32.mrf.mxu3  ;;  %v644_v59 = vpop.f32.mrf.mxu2  ;;  %193 = vmatmul.f32.gmra.mxu0 %v1516_v23  ;;  %1057 = vlog2.f32 %v539_v49  ;;  %v501_v23 = vand.u32 2147483647, %v1540_v5  ;;  %v542_v53 = vadd.f32 1e-05, %v510_v8 }
  0xbb   :  { %v1052_v60 = vpop.eup %1051  ;;  %v739_v61 = vmul.f32 1.442695, %v644_v59 }
  0xbc   :  { %v801_v2 = vsub.f32 %v143_v19, %v1052_v60  ;;  %v1054_v7 = vpop.eup %1053  ;;  %v533_v38 = vadd.f32 1e-05, %v501_v23 }
  0xbd   :  { %1059 = vpow2.f32 %v739_v61  ;;  %v583_v33 = vmul.f32 0.6931472, %v1054_v7  ;;  %v503_v61 = vand.u32 2147483647, %v1556_v51 }
  0xbe   :  { %v833_v9 = vmul.f32 %v801_v2, %v448_v56  ;;  %v262_v11 = vpop.f32.mrf.mxu1  ;;  %1061 = vlog2.f32 %v532_v4 }
  0xbf   :  { %v1056_v12 = vpop.eup %1055  ;;  %694 = vmatmul.f32.gmra.mxu2 %v581_v62  ;;  %718 = vmatmul.f32.gmra.mxu3 %v597_v63  ;;  %v354_v14 = vmul.f32 0.5, %v262_v11  ;;  %v149_v15 = vpop.f32.mrf.mxu0  ;;  %v511_v62 = vand.u32 2147483647, %v1500_v43 }
  0xc0   :  { %v1058_v17 = vpop.eup %1057  ;;  %v417_v20 = vadd.f32 1.0, %v1056_v12  ;;  %v865_v21 = vadd.f32 %v1052_v60, %v833_v9 }
  0xc1   :  { %1063 = vtanh.f32 %v354_v14  ;;  %309 = vmatmul.f32.gmra.mxu1 %v1521_v31  ;;  %v599_v36 = vmul.f32 0.6931472, %v1058_v17  ;;  %v535_v14 = vadd.f32 1e-05, %v503_v61 }
  0xc2   :  { %v449_v26 = vmul.f32 0.5, %v417_v20  ;;  %897 = vst [vmem:[#allocation8] sm:$0xff] %v865_v21  ;;  %v1545_v28 = vpop.f32.mrf.mxu3  ;;  %v647_v57 = vpop.f32.mrf.mxu2  ;;  %196 = vmatmul.f32.gmra.mxu0 %v1521_v31  ;;  %1065 = vlog2.f32 %v540_v27  ;;  %v543_v21 = vadd.f32 1e-05, %v511_v62 }
  0xc3   :  { %v1060_v30 = vpop.eup %1059  ;;  %v741_v32 = vmul.f32 1.442695, %v647_v57 }
  0xc4   :  { %v802_v37 = vsub.f32 %v146_v18, %v1060_v30  ;;  %v1062_v1 = vpop.eup %1061 }
  0xc5   :  { %1067 = vpow2.f32 %v741_v32  ;;  %v585_v48 = vmul.f32 0.6931472, %v1062_v1 }
  0xc6   :  { %v834_v3 = vmul.f32 %v802_v37, %v449_v26  ;;  %v265_v35 = vpop.f32.mrf.mxu1  ;;  %1069 = vlog2.f32 %v533_v38 }
  0xc7   :  { %v1064_v41 = vpop.eup %1063  ;;  %697 = vmatmul.f32.gmra.mxu2 %v583_v33  ;;  %721 = vmatmul.f32.gmra.mxu3 %v599_v36  ;;  %v355_v13 = vmul.f32 0.5, %v265_v35  ;;  %v152_v16 = vpop.f32.mrf.mxu0 }
  0xc8   :  { %v1066_v31 = vpop.eup %1065  ;;  %v418_v19 = vadd.f32 1.0, %v1064_v41  ;;  %v866_v22 = vadd.f32 %v1060_v30, %v834_v3 }
  0xc9   :  { %1071 = vtanh.f32 %v355_v13  ;;  %312 = vmatmul.f32.gmra.mxu1 %v1526_v6  ;;  %v601_v46 = vmul.f32 0.6931472, %v1066_v31 }
  0xca   :  { %v450_v29 = vmul.f32 0.5, %v418_v19  ;;  %898 = vst [vmem:[#allocation8 + $0x8] sm:$0xff] %v866_v22  ;;  %v1553_v34 = vpop.f32.mrf.mxu3  ;;  %v650_v39 = vpop.f32.mrf.mxu2  ;;  %199 = vmatmul.f32.gmra.mxu0 %v1526_v6  ;;  %1073 = vlog2.f32 %v541_v10 }
  0xcb   :  { %v1068_v45 = vpop.eup %1067  ;;  %v743_v42 = vmul.f32 1.442695, %v650_v39 }
  0xcc   :  { %v803_v49 = vsub.f32 %v149_v15, %v1068_v45  ;;  %v1070_v18 = vpop.eup %1069 }
  0xcd   :  { %1075 = vpow2.f32 %v743_v42  ;;  %v587_v11 = vmul.f32 0.6931472, %v1070_v18 }
  0xce   :  { %v835_v52 = vmul.f32 %v803_v49, %v450_v29  ;;  %v268_v40 = vpop.f32.mrf.mxu1  ;;  %1077 = vlog2.f32 %v534_v50 }
  0xcf   :  { %v1072_v54 = vpop.eup %1071  ;;  %700 = vmatmul.f32.gmra.mxu2 %v585_v48  ;;  %724 = vmatmul.f32.gmra.mxu3 %v601_v46  ;;  %v356_v55 = vmul.f32 0.5, %v268_v40  ;;  %v155_v56 = vpop.f32.mrf.mxu0 }
  0xd0   :  { %v1074_v6 = vpop.eup %1073  ;;  %v419_v59 = vadd.f32 1.0, %v1072_v54  ;;  %v867_v60 = vadd.f32 %v1068_v45, %v835_v52 }
  0xd1   :  { %1079 = vtanh.f32 %v356_v55  ;;  %315 = vmatmul.f32.gmra.mxu1 %v1532_v47  ;;  %v603_v27 = vmul.f32 0.6931472, %v1074_v6 }
  0xd2   :  { %v451_v63 = vmul.f32 0.5, %v419_v59  ;;  %899 = vst [vmem:[#allocation8 + $0x10] sm:$0xff] %v867_v60  ;;  %v1561_v2 = vpop.f32.mrf.mxu3  ;;  %v653_v4 = vpop.f32.mrf.mxu2  ;;  %202 = vmatmul.f32.gmra.mxu0 %v1532_v47  ;;  %1081 = vlog2.f32 %v542_v53 }
  0xd3   :  { %v1076_v7 = vpop.eup %1075  ;;  %v745_v9 = vmul.f32 1.442695, %v653_v4 }
  0xd4   :  { %v804_v12 = vsub.f32 %v152_v16, %v1076_v7  ;;  %v1078_v15 = vpop.eup %1077 }
  0xd5   :  { %1083 = vpow2.f32 %v745_v9  ;;  %v589_v38 = vmul.f32 0.6931472, %v1078_v15 }
  0xd6   :  { %v836_v17 = vmul.f32 %v804_v12, %v451_v63  ;;  %v271_v20 = vpop.f32.mrf.mxu1  ;;  %1085 = vlog2.f32 %v535_v14 }
  0xd7   :  { %v1080_v43 = vpop.eup %1079  ;;  %703 = vmatmul.f32.gmra.mxu2 %v587_v11  ;;  %727 = vmatmul.f32.gmra.mxu3 %v603_v27  ;;  %v357_v23 = vmul.f32 0.5, %v271_v20  ;;  %v158_v24 = vpop.f32.mrf.mxu0 }
  0xd8   :  { %v1082_v26 = vpop.eup %1081  ;;  %v420_v57 = vadd.f32 1.0, %v1080_v43  ;;  %v868_v47 = vadd.f32 %v1076_v7, %v836_v17 }
  0xd9   :  { %1087 = vtanh.f32 %v357_v23  ;;  %318 = vmatmul.f32.gmra.mxu1 %v1540_v5  ;;  %v605_v1 = vmul.f32 0.6931472, %v1082_v26 }
  0xda   :  { %v452_v30 = vmul.f32 0.5, %v420_v57  ;;  %900 = vst [vmem:[#allocation8 + $0x18] sm:$0xff] %v868_v47  ;;  %v1565_v32 = vpop.f32.mrf.mxu3  ;;  %v656_v33 = vpop.f32.mrf.mxu2  ;;  %205 = vmatmul.f32.gmra.mxu0 %v1540_v5  ;;  %1089 = vlog2.f32 %v543_v21 }
  0xdb   :  { %v1084_v36 = vpop.eup %1083  ;;  %v747_v37 = vmul.f32 1.442695, %v656_v33 }
  0xdc   :  { %v805_v3 = vsub.f32 %v155_v56, %v1084_v36  ;;  %v1086_v35 = vpop.eup %1085 }
  0xdd   :  { %1091 = vpow2.f32 %v747_v37  ;;  %v591_v42 = vmul.f32 0.6931472, %v1086_v35 }
  0xde   :  { %v837_v10 = vmul.f32 %v805_v3, %v452_v30  ;;  %v274_v41 = vpop.f32.mrf.mxu1 }
  0xdf   :  { %v1088_v13 = vpop.eup %1087  ;;  %706 = vmatmul.f32.gmra.mxu2 %v589_v38  ;;  %730 = vmatmul.f32.gmra.mxu3 %v605_v1  ;;  %v358_v16 = vmul.f32 0.5, %v274_v41  ;;  %v161_v31 = vpop.f32.mrf.mxu0 }
  0xe0   :  { %v1090_v19 = vpop.eup %1089  ;;  %v421_v22 = vadd.f32 1.0, %v1088_v13  ;;  %v869_v44 = vadd.f32 %v1084_v36, %v837_v10 }
  0xe1   :  { %1093 = vtanh.f32 %v358_v16  ;;  %321 = vmatmul.f32.gmra.mxu1 %v1548_v0  ;;  %v607_v48 = vmul.f32 0.6931472, %v1090_v19 }
  0xe2   :  { %v453_v5 = vmul.f32 0.5, %v421_v22  ;;  %901 = vst [vmem:[#allocation8 + $0x20] sm:$0xff] %v869_v44  ;;  %v1569_v8 = vpop.f32.mrf.mxu3  ;;  %v659_v29 = vpop.f32.mrf.mxu2  ;;  %208 = vmatmul.f32.gmra.mxu0 %v1548_v0 }
  0xe3   :  { %v1092_v39 = vpop.eup %1091  ;;  %v749_v45 = vmul.f32 1.442695, %v659_v29 }
  0xe4   :  { %v806_v46 = vsub.f32 %v158_v24, %v1092_v39 }
  0xe5   :  { %1095 = vpow2.f32 %v749_v45 }
  0xe6   :  { %v838_v49 = vmul.f32 %v806_v46, %v453_v5  ;;  %v277_v50 = vpop.f32.mrf.mxu1 }
  0xe7   :  { %v1094_v18 = vpop.eup %1093  ;;  %709 = vmatmul.f32.gmra.mxu2 %v591_v42  ;;  %733 = vmatmul.f32.gmra.mxu3 %v607_v48  ;;  %v359_v52 = vmul.f32 0.5, %v277_v50  ;;  %v164_v40 = vpop.f32.mrf.mxu0 }
  0xe8   :  { %v422_v53 = vadd.f32 1.0, %v1094_v18  ;;  %v870_v54 = vadd.f32 %v1092_v39, %v838_v49 }
  0xe9   :  { %1097 = vtanh.f32 %v359_v52  ;;  %324 = vmatmul.f32.gmra.mxu1 %v1556_v51 }
  0xea   :  { %v454_v55 = vmul.f32 0.5, %v422_v53  ;;  %902 = vst [vmem:[#allocation8 + $0x28] sm:$0xff] %v870_v54  ;;  %v1573_v0 = vpop.f32.mrf.mxu3  ;;  %v662_v56 = vpop.f32.mrf.mxu2  ;;  %211 = vmatmul.f32.gmra.mxu0 %v1556_v51 }
  0xeb   :  { %v1096_v6 = vpop.eup %1095  ;;  %v751_v59 = vmul.f32 1.442695, %v662_v56 }
  0xec   :  { %v807_v60 = vsub.f32 %v161_v31, %v1096_v6 }
  0xed   :  { %1099 = vpow2.f32 %v751_v59 }
  0xee   :  { %v839_v61 = vmul.f32 %v807_v60, %v454_v55  ;;  %v280_v62 = vpop.f32.mrf.mxu1 }
  0xef   :  { %v1098_v63 = vpop.eup %1097  ;;  %v360_v4 = vmul.f32 0.5, %v280_v62  ;;  %v167_v7 = vpop.f32.mrf.mxu0 }
  0xf0   :  { %v423_v9 = vadd.f32 1.0, %v1098_v63  ;;  %v871_v11 = vadd.f32 %v1096_v6, %v839_v61 }
  0xf1   :  { %1101 = vtanh.f32 %v360_v4 }
  0xf2   :  { %v455_v27 = vmul.f32 0.5, %v423_v9  ;;  %903 = vst [vmem:[#allocation8 + $0x30] sm:$0xff] %v871_v11  ;;  %v1576_v12 = vpop.f32.mrf.mxu3  ;;  %v665_v14 = vpop.f32.mrf.mxu2 }
  0xf3   :  { %v1100_v15 = vpop.eup %1099  ;;  %v753_v17 = vmul.f32 1.442695, %v665_v14 }
  0xf4   :  { %v808_v51 = vsub.f32 %v164_v40, %v1100_v15 }
  0xf5   :  { %1103 = vpow2.f32 %v753_v17 }
  0xf6   :  { %v840_v20 = vmul.f32 %v808_v51, %v455_v27  ;;  %v283_v21 = vpop.f32.mrf.mxu1 }
  0xf7   :  { %v1102_v43 = vpop.eup %1101  ;;  %v361_v23 = vmul.f32 0.5, %v283_v21  ;;  %v170_v24 = vpop.f32.mrf.mxu0 }
  0xf8   :  { %v424_v26 = vadd.f32 1.0, %v1102_v43  ;;  %v872_v57 = vadd.f32 %v1100_v15, %v840_v20 }
  0xf9   :  { %1105 = vtanh.f32 %v361_v23 }
  0xfa   :  { %904 = vst [vmem:[#allocation8 + $0x38] sm:$0xff] %v872_v57  ;;  %v1578_v47 = vpop.f32.mrf.mxu3  ;;  %v668_v30 = vpop.f32.mrf.mxu2  ;;  %v456_v33 = vmul.f32 0.5, %v424_v26 }
  0xfb   :  { %v755_v36 = vmul.f32 1.442695, %v668_v30  ;;  %v1104_v37 = vpop.eup %1103 }
  0xfc   :  { %v809_v38 = vsub.f32 %v167_v7, %v1104_v37 }
  0xfd   :  { %1107 = vpow2.f32 %v755_v36 }
  0xfe   :  { %v286_v1 = vpop.f32.mrf.mxu1  ;;  %v841_v35 = vmul.f32 %v809_v38, %v456_v33 }
  0xff   :  { %v1106_v3 = vpop.eup %1105  ;;  %v362_v10 = vmul.f32 0.5, %v286_v1  ;;  %v173_v41 = vpop.f32.mrf.mxu0 }
 0x100   :  { %v425_v13 = vadd.f32 1.0, %v1106_v3  ;;  %v873_v16 = vadd.f32 %v1104_v37, %v841_v35 }
 0x101   :  { %1109 = vtanh.f32 %v362_v10 }
 0x102   :  { %v1580_v31 = vpop.f32.mrf.mxu3  ;;  %v671_v19 = vpop.f32.mrf.mxu2  ;;  %v457_v22 = vmul.f32 0.5, %v425_v13  ;;  %905 = vst [vmem:[#allocation8 + $0x40] sm:$0xff] %v873_v16 }
 0x103   :  { %v757_v44 = vmul.f32 1.442695, %v671_v19  ;;  %v1108_v5 = vpop.eup %1107 }
 0x104   :  { %v810_v29 = vsub.f32 %v170_v24, %v1108_v5 }
 0x105   :  { %1111 = vpow2.f32 %v757_v44 }
 0x106   :  { %v289_v39 = vpop.f32.mrf.mxu1  ;;  %v842_v42 = vmul.f32 %v810_v29, %v457_v22 }
 0x107   :  { %v1110_v45 = vpop.eup %1109  ;;  %v363_v48 = vmul.f32 0.5, %v289_v39  ;;  %v176_v46 = vpop.f32.mrf.mxu0 }
 0x108   :  { %v426_v49 = vadd.f32 1.0, %v1110_v45  ;;  %v874_v50 = vadd.f32 %v1108_v5, %v842_v42 }
 0x109   :  { %1113 = vtanh.f32 %v363_v48 }
 0x10a   :  { %v1582_v18 = vpop.f32.mrf.mxu3  ;;  %v674_v52 = vpop.f32.mrf.mxu2  ;;  %v458_v40 = vmul.f32 0.5, %v426_v49  ;;  %906 = vst [vmem:[#allocation8 + $0x48] sm:$0xff] %v874_v50 }
 0x10b   :  { %v759_v53 = vmul.f32 1.442695, %v674_v52  ;;  %v1112_v54 = vpop.eup %1111 }
 0x10c   :  { %v811_v55 = vsub.f32 %v173_v41, %v1112_v54 }
 0x10d   :  { %1115 = vpow2.f32 %v759_v53 }
 0x10e   :  { %v292_v56 = vpop.f32.mrf.mxu1  ;;  %v843_v59 = vmul.f32 %v811_v55, %v458_v40  ;;  %v376_v55 = vmul.f32 0.5, %v1576_v12  ;;  %v377_v12 = vmul.f32 0.5, %v1578_v47 }
 0x10f   :  { %v1114_v6 = vpop.eup %1113  ;;  %v364_v60 = vmul.f32 0.5, %v292_v56  ;;  %v179_v61 = vpop.f32.mrf.mxu0 }
 0x110   :  { %v427_v62 = vadd.f32 1.0, %v1114_v6  ;;  %v875_v63 = vadd.f32 %v1112_v54, %v843_v59 }
 0x111   :  { %1117 = vtanh.f32 %v364_v60 }
 0x112   :  { %v1584_v4 = vpop.f32.mrf.mxu3  ;;  %v677_v7 = vpop.f32.mrf.mxu2  ;;  %v459_v9 = vmul.f32 0.5, %v427_v62  ;;  %907 = vst [vmem:[#allocation8 + $0x50] sm:$0xff] %v875_v63 }
 0x113   :  { %v761_v11 = vmul.f32 1.442695, %v677_v7  ;;  %v1116_v27 = vpop.eup %1115 }
 0x114   :  { %v812_v14 = vsub.f32 %v176_v46, %v1116_v27 }
 0x115   :  { %1119 = vpow2.f32 %v761_v11 }
 0x116   :  { %v295_v15 = vpop.f32.mrf.mxu1  ;;  %v844_v51 = vmul.f32 %v812_v14, %v459_v9 }
 0x117   :  { %v1118_v17 = vpop.eup %1117  ;;  %v365_v20 = vmul.f32 0.5, %v295_v15  ;;  %v182_v21 = vpop.f32.mrf.mxu0 }
 0x118   :  { %v428_v43 = vadd.f32 1.0, %v1118_v17  ;;  %v876_v23 = vadd.f32 %v1116_v27, %v844_v51 }
 0x119   :  { %1121 = vtanh.f32 %v365_v20 }
 0x11a   :  { %v1586_v24 = vpop.f32.mrf.mxu3  ;;  %v680_v26 = vpop.f32.mrf.mxu2  ;;  %v460_v57 = vmul.f32 0.5, %v428_v43  ;;  %908 = vst [vmem:[#allocation8 + $0x58] sm:$0xff] %v876_v23 }
 0x11b   :  { %v763_v30 = vmul.f32 1.442695, %v680_v26  ;;  %v1120_v33 = vpop.eup %1119 }
 0x11c   :  { %v813_v36 = vsub.f32 %v179_v61, %v1120_v33 }
 0x11d   :  { %1123 = vpow2.f32 %v763_v30 }
 0x11e   :  { %v298_v37 = vpop.f32.mrf.mxu1  ;;  %v845_v1 = vmul.f32 %v813_v36, %v460_v57 }
 0x11f   :  { %v1122_v38 = vpop.eup %1121  ;;  %v366_v3 = vmul.f32 0.5, %v298_v37  ;;  %v185_v35 = vpop.f32.mrf.mxu0 }
 0x120   :  { %v429_v10 = vadd.f32 1.0, %v1122_v38  ;;  %v877_v41 = vadd.f32 %v1120_v33, %v845_v1 }
 0x121   :  { %1125 = vtanh.f32 %v366_v3 }
 0x122   :  { %v1588_v13 = vpop.f32.mrf.mxu3  ;;  %v683_v16 = vpop.f32.mrf.mxu2  ;;  %v461_v19 = vmul.f32 0.5, %v429_v10  ;;  %909 = vst [vmem:[#allocation8 + $0x60] sm:$0xff] %v877_v41  ;;  %v378_v41 = vmul.f32 0.5, %v1580_v31 }
 0x123   :  { %v765_v22 = vmul.f32 1.442695, %v683_v16  ;;  %v1124_v44 = vpop.eup %1123 }
 0x124   :  { %v814_v5 = vsub.f32 %v182_v21, %v1124_v44 }
 0x125   :  { %1127 = vpow2.f32 %v765_v22 }
 0x126   :  { %v301_v29 = vpop.f32.mrf.mxu1  ;;  %v846_v45 = vmul.f32 %v814_v5, %v461_v19 }
 0x127   :  { %v1126_v39 = vpop.eup %1125  ;;  %v367_v42 = vmul.f32 0.5, %v301_v29  ;;  %v188_v48 = vpop.f32.mrf.mxu0 }
 0x128   :  { %v430_v46 = vadd.f32 1.0, %v1126_v39  ;;  %v878_v49 = vadd.f32 %v1124_v44, %v846_v45 }
 0x129   :  { %1129 = vtanh.f32 %v367_v42 }
 0x12a   :  { %v1590_v50 = vpop.f32.mrf.mxu3  ;;  %v686_v52 = vpop.f32.mrf.mxu2  ;;  %v462_v40 = vmul.f32 0.5, %v430_v46  ;;  %910 = vst [vmem:[#allocation8 + $0x68] sm:$0xff] %v878_v49 }
 0x12b   :  { %v767_v53 = vmul.f32 1.442695, %v686_v52  ;;  %v1128_v54 = vpop.eup %1127 }
 0x12c   :  { %v815_v56 = vsub.f32 %v185_v35, %v1128_v54 }
 0x12d   :  { %1131 = vpow2.f32 %v767_v53 }
 0x12e   :  { %v304_v6 = vpop.f32.mrf.mxu1  ;;  %v847_v60 = vmul.f32 %v815_v56, %v462_v40  ;;  %1133 = vtanh.f32 %v376_v55 }
 0x12f   :  { %v1130_v59 = vpop.eup %1129  ;;  %v368_v61 = vmul.f32 0.5, %v304_v6  ;;  %v191_v62 = vpop.f32.mrf.mxu0 }
 0x130   :  { %v431_v63 = vadd.f32 1.0, %v1130_v59  ;;  %v879_v7 = vadd.f32 %v1128_v54, %v847_v60  ;;  %v379_v59 = vmul.f32 0.5, %v1582_v18 }
 0x131   :  { %1135 = vtanh.f32 %v368_v61 }
 0x132   :  { %v689_v9 = vpop.f32.mrf.mxu2  ;;  %v713_v11 = vpop.f32.mrf.mxu3  ;;  %v463_v27 = vmul.f32 0.5, %v431_v63  ;;  %911 = vst [vmem:[#allocation8 + $0x70] sm:$0xff] %v879_v7 }
 0x133   :  { %v769_v14 = vmul.f32 1.442695, %v689_v9  ;;  %v785_v15 = vmul.f32 1.442695, %v713_v11  ;;  %v1132_v17 = vpop.eup %1131 }
 0x134   :  { %v816_v51 = vsub.f32 %v188_v48, %v1132_v17  ;;  %v1134_v20 = vpop.eup %1133 }
 0x135   :  { %1137 = vpow2.f32 %v769_v14  ;;  %v440_v33 = vadd.f32 1.0, %v1134_v20 }
 0x136   :  { %1139 = vpow2.f32 %v785_v15  ;;  %v307_v21 = vpop.f32.mrf.mxu1  ;;  %v848_v23 = vmul.f32 %v816_v51, %v463_v27 }
 0x137   :  { %v1136_v43 = vpop.eup %1135  ;;  %v369_v26 = vmul.f32 0.5, %v307_v21  ;;  %v194_v57 = vpop.f32.mrf.mxu0  ;;  %1141 = vtanh.f32 %v377_v12  ;;  %v472_v19 = vmul.f32 0.5, %v440_v33 }
 0x138   :  { %v432_v30 = vadd.f32 1.0, %v1136_v43  ;;  %v880_v36 = vadd.f32 %v1132_v17, %v848_v23 }
 0x139   :  { %1143 = vtanh.f32 %v369_v26 }
 0x13a   :  { %v464_v37 = vmul.f32 0.5, %v432_v30  ;;  %v692_v38 = vpop.f32.mrf.mxu2  ;;  %v716_v1 = vpop.f32.mrf.mxu3  ;;  %912 = vst [vmem:[#allocation8 + $0x78] sm:$0xff] %v880_v36  ;;  %v380_v30 = vmul.f32 0.5, %v1584_v4 }
 0x13b   :  { %v1138_v3 = vpop.eup %1137  ;;  %v771_v47 = vmul.f32 1.442695, %v692_v38  ;;  %v787_v35 = vmul.f32 1.442695, %v716_v1 }
 0x13c   :  { %v1140_v10 = vpop.eup %1139  ;;  %v817_v16 = vsub.f32 %v191_v62, %v1138_v3 }
 0x13d   :  { %v825_v22 = vsub.f32 %v1530_v25, %v1140_v10  ;;  %1145 = vpow2.f32 %v771_v47  ;;  %v1142_v44 = vpop.eup %1141 }
 0x13e   :  { %1147 = vpow2.f32 %v787_v35  ;;  %v849_v5 = vmul.f32 %v817_v16, %v464_v37  ;;  %v310_v29 = vpop.f32.mrf.mxu1  ;;  %v441_v52 = vadd.f32 1.0, %v1142_v44 }
 0x13f   :  { %v1144_v39 = vpop.eup %1143  ;;  %v857_v45 = vmul.f32 %v825_v22, %v472_v19  ;;  %v370_v42 = vmul.f32 0.5, %v310_v29  ;;  %v197_v48 = vpop.f32.mrf.mxu0  ;;  %1149 = vtanh.f32 %v378_v41 }
 0x140   :  { %v433_v46 = vadd.f32 1.0, %v1144_v39  ;;  %v881_v49 = vadd.f32 %v1138_v3, %v849_v5  ;;  %v473_v61 = vmul.f32 0.5, %v441_v52 }
 0x141   :  { %v889_v40 = vadd.f32 %v1140_v10, %v857_v45  ;;  %1151 = vtanh.f32 %v370_v42 }
 0x142   :  { %v465_v31 = vmul.f32 0.5, %v433_v46  ;;  %913 = vst [vmem:[#allocation8 + $0x80] sm:$0xff] %v881_v49  ;;  %v695_v53 = vpop.f32.mrf.mxu2  ;;  %v719_v54 = vpop.f32.mrf.mxu3 }
 0x143   :  { %v1146_v25 = vpop.eup %1145  ;;  %921 = vst [vmem:[#allocation8 + $0xc0] sm:$0xff] %v889_v40  ;;  %v773_v55 = vmul.f32 1.442695, %v695_v53  ;;  %v789_v56 = vmul.f32 1.442695, %v719_v54 }
 0x144   :  { %v1148_v6 = vpop.eup %1147  ;;  %v818_v60 = vsub.f32 %v194_v57, %v1146_v25 }
 0x145   :  { %v826_v62 = vsub.f32 %v1537_v58, %v1148_v6  ;;  %1153 = vpow2.f32 %v773_v55  ;;  %v1150_v63 = vpop.eup %1149 }
 0x146   :  { %1155 = vpow2.f32 %v789_v56  ;;  %v850_v7 = vmul.f32 %v818_v60, %v465_v31  ;;  %v313_v9 = vpop.f32.mrf.mxu1  ;;  %v442_v12 = vadd.f32 1.0, %v1150_v63 }
 0x147   :  { %v1152_v11 = vpop.eup %1151  ;;  %v858_v27 = vmul.f32 %v826_v62, %v473_v61  ;;  %v371_v14 = vmul.f32 0.5, %v313_v9  ;;  %1157 = vtanh.f32 %v379_v59  ;;  %v200_v20 = vpop.f32.mrf.mxu0 }
 0x148   :  { %v434_v15 = vadd.f32 1.0, %v1152_v11  ;;  %v882_v17 = vadd.f32 %v1146_v25, %v850_v7  ;;  %v474_v36 = vmul.f32 0.5, %v442_v12  ;;  %v382_v11 = vmul.f32 0.5, %v1588_v13 }
 0x149   :  { %v890_v51 = vadd.f32 %v1148_v6, %v858_v27  ;;  %1159 = vtanh.f32 %v371_v14 }
 0x14a   :  { %v466_v18 = vmul.f32 0.5, %v434_v15  ;;  %914 = vst [vmem:[#allocation8 + $0x88] sm:$0xff] %v882_v17  ;;  %v698_v21 = vpop.f32.mrf.mxu2  ;;  %v722_v43 = vpop.f32.mrf.mxu3 }
 0x14b   :  { %v1154_v58 = vpop.eup %1153  ;;  %922 = vst [vmem:[#allocation8 + $0xc8] sm:$0xff] %v890_v51  ;;  %v775_v23 = vmul.f32 1.442695, %v698_v21  ;;  %v791_v26 = vmul.f32 1.442695, %v722_v43 }
 0x14c   :  { %v1156_v57 = vpop.eup %1155  ;;  %v819_v33 = vsub.f32 %v197_v48, %v1154_v58  ;;  %v381_v48 = vmul.f32 0.5, %v1586_v24 }
 0x14d   :  { %v827_v37 = vsub.f32 %v1545_v28, %v1156_v57  ;;  %1161 = vpow2.f32 %v775_v23  ;;  %v1158_v38 = vpop.eup %1157 }
 0x14e   :  { %1163 = vpow2.f32 %v791_v26  ;;  %v851_v1 = vmul.f32 %v819_v33, %v466_v18  ;;  %v316_v3 = vpop.f32.mrf.mxu1  ;;  %v443_v19 = vadd.f32 1.0, %v1158_v38 }
 0x14f   :  { %v1160_v47 = vpop.eup %1159  ;;  %v859_v35 = vmul.f32 %v827_v37, %v474_v36  ;;  %v372_v10 = vmul.f32 0.5, %v316_v3  ;;  %1165 = vtanh.f32 %v380_v30  ;;  %v203_v45 = vpop.f32.mrf.mxu0 }
 0x150   :  { %v435_v41 = vadd.f32 1.0, %v1160_v47  ;;  %v883_v16 = vadd.f32 %v1154_v58, %v851_v1  ;;  %v475_v49 = vmul.f32 0.5, %v443_v19  ;;  %v383_v1 = vmul.f32 0.5, %v1590_v50 }
 0x151   :  { %v891_v22 = vadd.f32 %v1156_v57, %v859_v35  ;;  %1167 = vtanh.f32 %v372_v10 }
 0x152   :  { %v467_v44 = vmul.f32 0.5, %v435_v41  ;;  %915 = vst [vmem:[#allocation8 + $0x90] sm:$0xff] %v883_v16  ;;  %v701_v4 = vpop.f32.mrf.mxu2  ;;  %v725_v5 = vpop.f32.mrf.mxu3 }
 0x153   :  { %v1162_v29 = vpop.eup %1161  ;;  %923 = vst [vmem:[#allocation8 + $0xd0] sm:$0xff] %v891_v22  ;;  %v777_v28 = vmul.f32 1.442695, %v701_v4  ;;  %v793_v39 = vmul.f32 1.442695, %v725_v5 }
 0x154   :  { %v1164_v42 = vpop.eup %1163  ;;  %v820_v46 = vsub.f32 %v200_v20, %v1162_v29 }
 0x155   :  { %v828_v52 = vsub.f32 %v1553_v34, %v1164_v42  ;;  %1169 = vpow2.f32 %v777_v28  ;;  %v1166_v40 = vpop.eup %1165 }
 0x156   :  { %1171 = vpow2.f32 %v793_v39  ;;  %v852_v31 = vmul.f32 %v820_v46, %v467_v44  ;;  %v319_v53 = vpop.f32.mrf.mxu1  ;;  %v444_v59 = vadd.f32 1.0, %v1166_v40 }
 0x157   :  { %v1168_v54 = vpop.eup %1167  ;;  %v860_v25 = vmul.f32 %v828_v52, %v475_v49  ;;  %v373_v55 = vmul.f32 0.5, %v319_v53  ;;  %1173 = vtanh.f32 %v381_v48  ;;  %v206_v17 = vpop.f32.mrf.mxu0 }
 0x158   :  { %v436_v56 = vadd.f32 1.0, %v1168_v54  ;;  %v884_v6 = vadd.f32 %v1162_v29, %v852_v31  ;;  %v476_v14 = vmul.f32 0.5, %v444_v59 }
 0x159   :  { %v892_v60 = vadd.f32 %v1164_v42, %v860_v25  ;;  %1175 = vtanh.f32 %v373_v55 }
 0x15a   :  { %v468_v61 = vmul.f32 0.5, %v436_v56  ;;  %916 = vst [vmem:[#allocation8 + $0x98] sm:$0xff] %v884_v6  ;;  %v704_v24 = vpop.f32.mrf.mxu2  ;;  %v728_v62 = vpop.f32.mrf.mxu3 }
 0x15b   :  { %v1170_v63 = vpop.eup %1169  ;;  %924 = vst [vmem:[#allocation8 + $0xd8] sm:$0xff] %v892_v60  ;;  %v779_v34 = vmul.f32 1.442695, %v704_v24  ;;  %v795_v7 = vmul.f32 1.442695, %v728_v62 }
 0x15c   :  { %v1172_v9 = vpop.eup %1171  ;;  %v821_v27 = vsub.f32 %v203_v45, %v1170_v63 }
 0x15d   :  { %v829_v15 = vsub.f32 %v1561_v2, %v1172_v9  ;;  %1177 = vpow2.f32 %v779_v34  ;;  %v1174_v12 = vpop.eup %1173 }
 0x15e   :  { %1179 = vpow2.f32 %v795_v7  ;;  %v853_v51 = vmul.f32 %v821_v27, %v468_v61  ;;  %v322_v20 = vpop.f32.mrf.mxu1  ;;  %v445_v26 = vadd.f32 1.0, %v1174_v12 }
 0x15f   :  { %v1176_v18 = vpop.eup %1175  ;;  %v861_v21 = vmul.f32 %v829_v15, %v476_v14  ;;  %v374_v43 = vmul.f32 0.5, %v322_v20  ;;  %1181 = vtanh.f32 %v382_v11  ;;  %v209_v4 = vpop.f32.mrf.mxu0 }
 0x160   :  { %v437_v58 = vadd.f32 1.0, %v1176_v18  ;;  %v885_v23 = vadd.f32 %v1170_v63, %v853_v51  ;;  %v477_v47 = vmul.f32 0.5, %v445_v26 }
 0x161   :  { %v893_v57 = vadd.f32 %v1172_v9, %v861_v21  ;;  %1183 = vtanh.f32 %v374_v43 }
 0x162   :  { %v469_v13 = vmul.f32 0.5, %v437_v58  ;;  %917 = vst [vmem:[#allocation8 + $0xa0] sm:$0xff] %v885_v23  ;;  %v707_v30 = vpop.f32.mrf.mxu2  ;;  %v731_v33 = vpop.f32.mrf.mxu3 }
 0x163   :  { %v1178_v2 = vpop.eup %1177  ;;  %925 = vst [vmem:[#allocation8 + $0xe0] sm:$0xff] %v893_v57  ;;  %v781_v36 = vmul.f32 1.442695, %v707_v30  ;;  %v797_v37 = vmul.f32 1.442695, %v731_v33 }
 0x164   :  { %v1180_v38 = vpop.eup %1179  ;;  %v822_v3 = vsub.f32 %v206_v17, %v1178_v2 }
 0x165   :  { %v830_v35 = vsub.f32 %v1565_v32, %v1180_v38  ;;  %1185 = vpow2.f32 %v781_v36  ;;  %v1182_v10 = vpop.eup %1181 }
 0x166   :  { %1187 = vpow2.f32 %v797_v37  ;;  %v854_v41 = vmul.f32 %v822_v3, %v469_v13  ;;  %v325_v16 = vpop.f32.mrf.mxu1  ;;  %v446_v28 = vadd.f32 1.0, %v1182_v10 }
 0x167   :  { %v1184_v19 = vpop.eup %1183  ;;  %v862_v22 = vmul.f32 %v830_v35, %v477_v47  ;;  %v375_v44 = vmul.f32 0.5, %v325_v16  ;;  %1189 = vtanh.f32 %v383_v1  ;;  %v212_v61 = vpop.f32.mrf.mxu0 }
 0x168   :  { %v438_v5 = vadd.f32 1.0, %v1184_v19  ;;  %v886_v29 = vadd.f32 %v1178_v2, %v854_v41  ;;  %v478_v40 = vmul.f32 0.5, %v446_v28 }
 0x169   :  { %v894_v39 = vadd.f32 %v1180_v38, %v862_v22  ;;  %1191 = vtanh.f32 %v375_v44 }
 0x16a   :  { %v470_v50 = vmul.f32 0.5, %v438_v5  ;;  %918 = vst [vmem:[#allocation8 + $0xa8] sm:$0xff] %v886_v29  ;;  %v710_v45 = vpop.f32.mrf.mxu2  ;;  %v734_v42 = vpop.f32.mrf.mxu3 }
 0x16b   :  { %v1186_v32 = vpop.eup %1185  ;;  %926 = vst [vmem:[#allocation8 + $0xe8] sm:$0xff] %v894_v39  ;;  %v783_v48 = vmul.f32 1.442695, %v710_v45  ;;  %v799_v46 = vmul.f32 1.442695, %v734_v42 }
 0x16c   :  { %v1188_v49 = vpop.eup %1187  ;;  %v823_v52 = vsub.f32 %v209_v4, %v1186_v32 }
 0x16d   :  { %v831_v31 = vsub.f32 %v1569_v8, %v1188_v49  ;;  %1193 = vpow2.f32 %v783_v48  ;;  %v1190_v53 = vpop.eup %1189 }
 0x16e   :  { %1195 = vpow2.f32 %v799_v46  ;;  %v855_v54 = vmul.f32 %v823_v52, %v470_v50  ;;  %v447_v59 = vadd.f32 1.0, %v1190_v53 }
 0x16f   :  { %v1192_v25 = vpop.eup %1191  ;;  %v863_v55 = vmul.f32 %v831_v31, %v478_v40 }
 0x170   :  { %v439_v56 = vadd.f32 1.0, %v1192_v25  ;;  %v887_v6 = vadd.f32 %v1186_v32, %v855_v54  ;;  %v479_v7 = vmul.f32 0.5, %v447_v59 }
 0x171   :  { %v895_v60 = vadd.f32 %v1188_v49, %v863_v55 }
 0x172   :  { %v471_v24 = vmul.f32 0.5, %v439_v56  ;;  %919 = vst [vmem:[#allocation8 + $0xb0] sm:$0xff] %v887_v6 }
 0x173   :  { %v1194_v62 = vpop.eup %1193  ;;  %927 = vst [vmem:[#allocation8 + $0xf0] sm:$0xff] %v895_v60 }
 0x174   :  { %v1196_v63 = vpop.eup %1195  ;;  %v824_v34 = vsub.f32 %v212_v61, %v1194_v62 }
 0x175   :  { %v832_v8 = vsub.f32 %v1573_v0, %v1196_v63 }
 0x176   :  { %v856_v9 = vmul.f32 %v824_v34, %v471_v24 }
 0x177   :  { %v864_v11 = vmul.f32 %v832_v8, %v479_v7 }
 0x178   :  { %v888_v27 = vadd.f32 %v1194_v62, %v856_v9 }
 0x179   :  { %v896_v14 = vadd.f32 %v1196_v63, %v864_v11 }
 0x17a   :  { %920 = vst [vmem:[#allocation8 + $0xb8] sm:$0xff] %v888_v27 }
 0x17b   :  { %928 = vst [vmem:[#allocation8 + $0xf8] sm:$0xff] %v896_v14 }
 0x17c   :  { %941 = dma.vmem_to_hbm [thread:$0]  %s934_s29, 4096, %s936_s5, [#allocation4], %s1303_s24, %s1303_s24, %s1304_s25  }
 0x17d   :  { %1297 = dma.done.wait [#allocation4], 4096  }
 0x17e   :  { %1298 = vsyncadd [#allocation4], 4294963200 }
 0x17f   :  { %946 = vsyncpa [#allocation3], 1 }
 0x180   :  { %947 = vsyncpa [#allocation6], 1 }
 0x181   :  { %948 = vsyncpa [#allocation4], 1 }

// kernel: tpu_custom_call.1
= control target key start
LH: loop header
LB: loop body
LE: loop exit
PB: predicated region body
PF: predicated region fallthrough
CT: control target
= control target key end

     0   :  { %8 = vsyncpa [#allocation3], 0  ;;  %s1614_s0 = inlined_call_operand.hbm [shape: f32[256,128], index: 0, kind: input, shape index: {}]   ;;  %s1615_s1 = inlined_call_operand.hbm [shape: f32[128,256], index: 1, kind: input, shape index: {}]   ;;  %s1616_s2 = inlined_call_operand.hbm [shape: f32[128,128], index: 2, kind: input, shape index: {}]   ;;  %s1617_s3 = inlined_call_operand.hbm [shape: f32[256,128], index: 3, kind: output, shape index: {}]  }
   0x1   :  { %9 = vsyncpa [#allocation6], 0  ;;  %s28_s14 = sshll.u32 %s1615_s1, 4  ;;  %s29_s14 = int_to_ptr.hbm [resolvable:$true] %s28_s14 }
   0x2   :  { %10 = vsyncpa [#allocation4], 0  ;;  %s1299_s15 = smov [#allocation5]   ;;  %s15_s19 = sshll.u32 %s1614_s0, 4  ;;  %s16_s19 = int_to_ptr.hbm [resolvable:$true] %s15_s19 }
   0x3   :  { %s30_s16 = sshll.u32 %s1299_s15, 4  ;;  %s1300_s20 = smov 256   ;;  %s31_s16 = int_to_ptr.vmem [resolvable:$true] %s30_s16 }
   0x4   :  { %s1301_s21 = smov 16   ;;  %s1302_s22 = smov [#allocation2]  }
   0x5   :  { %36 = dma.hbm_to_vmem [thread:$0]  %s29_s14, 4096, %s31_s16, [#allocation6], %s1300_s20, %s1300_s20, %s1301_s21  }
   0x6   :  { %s17_s23 = sshll.u32 %s1302_s22, 4  ;;  %s1303_s24 = smov 128   ;;  %s18_s23 = int_to_ptr.vmem [resolvable:$true] %s17_s23 }
   0x7   :  { %s1304_s25 = smov 8   ;;  %s41_s27 = sshll.u32 %s1616_s2, 4  ;;  %s42_s27 = int_to_ptr.hbm [resolvable:$true] %s41_s27 }
   0x8   :  { %23 = dma.hbm_to_vmem [thread:$0]  %s16_s19, 4096, %s18_s23, [#allocation3], %s1303_s24, %s1303_s24, %s1304_s25  }
   0x9   :  { %s1305_s28 = smov [#allocation7]  }
   0xa   :  { %s43_s0 = sshll.u32 %s1305_s28, 4  ;;  %s44_s0 = int_to_ptr.vmem [resolvable:$true] %s43_s0 }
   0xb   :  { %49 = dma.hbm_to_vmem [thread:$0]  %s42_s27, 2048, %s44_s0, [#allocation6], %s1303_s24, %s1303_s24, %s1304_s25  }
   0xc   :  { %1293 = dma.done.wait [#allocation3], 4096  }
   0xd   :  { %1294 = vsyncadd [#allocation3], 4294963200 }
   0xe   :  { %1295 = dma.done.wait [#allocation6], 6144  }
   0xf   :  { %1296 = vsyncadd [#allocation6], 4294961152  ;;  %v124_v0 = vld [vmem:[#allocation5 + $0xf0] sm:$0xff]  ;;  %v1342_v1 = vld [vmem:[#allocation7 + $0x78] sm:$0xff]  ;;  %s1306_s2 = smov [#allocation8]   ;;  %s935_s5 = sshll.u32 %s1617_s3, 4  ;;  %s936_s5 = int_to_ptr.hbm [resolvable:$true] %s935_s5 }
  0x10   :  { %v122_v2 = vld [vmem:[#allocation5 + $0xe0] sm:$0xff]  ;;  %949 = vmatpush.msra.mxu3 %v124_v0  ;;  %624 = vmatpush.msra.mxu2 %v1342_v1  ;;  %v1345_v3 = vld [vmem:[#allocation7 + $0x70] sm:$0xff]  ;;  %v1347_v4 = vld [vmem:[#allocation5 + $0xf8] sm:$0xff]  ;;  %s933_s29 = sshll.u32 %s1306_s2, 4  ;;  %s934_s29 = int_to_ptr.vmem [resolvable:$true] %s933_s29 }
  0x11   :  { %v120_v5 = vld [vmem:[#allocation5 + $0xd0] sm:$0xff]  ;;  %239 = vmatpush.msra.mxu1 %v1347_v4  ;;  %v1350_v6 = vld [vmem:[#allocation7 + $0x68] sm:$0xff]  ;;  %126 = vmatpush.msra.mxu0 %v124_v0  ;;  %v1355_v8 = vld [vmem:[#allocation5 + $0xd8] sm:$0xff] }
  0x12   :  { %v1352_v7 = vld [vmem:[#allocation5 + $0xe8] sm:$0xff]  ;;  %950 = vmatpush.msra.mxu3 %v122_v2  ;;  %625 = vmatpush.msra.mxu2 %v1345_v3  ;;  %v118_v9 = vld [vmem:[#allocation5 + $0xc0] sm:$0xff]  ;;  %v116_v12 = vld [vmem:[#allocation5 + $0xb0] sm:$0xff] }
  0x13   :  { %240 = vmatpush.msra.mxu1 %v1352_v7  ;;  %v1358_v10 = vld [vmem:[#allocation7 + $0x60] sm:$0xff]  ;;  %127 = vmatpush.msra.mxu0 %v122_v2  ;;  %v1361_v11 = vld [vmem:[#allocation5 + $0xc8] sm:$0xff]  ;;  %v1364_v13 = vld [vmem:[#allocation7 + $0x58] sm:$0xff] }
  0x14   :  { %951 = vmatpush.msra.mxu3 %v120_v5  ;;  %626 = vmatpush.msra.mxu2 %v1350_v6  ;;  %v1367_v14 = vld [vmem:[#allocation5 + $0xb8] sm:$0xff]  ;;  %v114_v15 = vld [vmem:[#allocation5 + $0xa0] sm:$0xff]  ;;  %v1370_v16 = vld [vmem:[#allocation7 + $0x50] sm:$0xff] }
  0x15   :  { %241 = vmatpush.msra.mxu1 %v1355_v8  ;;  %128 = vmatpush.msra.mxu0 %v120_v5  ;;  %v1373_v17 = vld [vmem:[#allocation5 + $0xa8] sm:$0xff]  ;;  %v112_v18 = vld [vmem:[#allocation5 + $0x90] sm:$0xff]  ;;  %v1379_v20 = vld [vmem:[#allocation5 + $0x98] sm:$0xff] }
  0x16   :  { %952 = vmatpush.msra.mxu3 %v118_v9  ;;  %627 = vmatpush.msra.mxu2 %v1358_v10  ;;  %v1376_v19 = vld [vmem:[#allocation7 + $0x48] sm:$0xff]  ;;  %v110_v21 = vld [vmem:[#allocation5 + $0x80] sm:$0xff]  ;;  %v108_v24 = vld [vmem:[#allocation5 + $0x70] sm:$0xff] }
  0x17   :  { %242 = vmatpush.msra.mxu1 %v1361_v11  ;;  %129 = vmatpush.msra.mxu0 %v118_v9  ;;  %v1382_v22 = vld [vmem:[#allocation7 + $0x40] sm:$0xff]  ;;  %v1385_v23 = vld [vmem:[#allocation5 + $0x88] sm:$0xff]  ;;  %v1388_v25 = vld [vmem:[#allocation7 + $0x38] sm:$0xff] }
  0x18   :  { %953 = vmatpush.msra.mxu3 %v116_v12  ;;  %628 = vmatpush.msra.mxu2 %v1364_v13  ;;  %v1391_v26 = vld [vmem:[#allocation5 + $0x78] sm:$0xff]  ;;  %v1393_v27 = vld [vmem:[#allocation2] sm:$0xff]  ;;  %v1396_v29 = vld [vmem:[#allocation7 + $0x30] sm:$0xff] }
  0x19   :  { %243 = vmatpush.msra.mxu1 %v1367_v14  ;;  %130 = vmatpush.msra.mxu0 %v116_v12  ;;  %v106_v28 = vld [vmem:[#allocation5 + $0x60] sm:$0xff]  ;;  %v480_v30 = vand.u32 2147483647, %v1393_v27  ;;  %v1400_v31 = vld [vmem:[#allocation5 + $0x68] sm:$0xff]  ;;  %v104_v33 = vld [vmem:[#allocation5 + $0x50] sm:$0xff] }
  0x1a   :  { %954 = vmatpush.msra.mxu3 %v114_v15  ;;  %629 = vmatpush.msra.mxu2 %v1370_v16  ;;  %v1402_v32 = vld [vmem:[#allocation2 + $0x8] sm:$0xff]  ;;  %v1408_v36 = vld [vmem:[#allocation5 + $0x58] sm:$0xff]  ;;  %v102_v38 = vld [vmem:[#allocation5 + $0x40] sm:$0xff] }
  0x1b   :  { %244 = vmatpush.msra.mxu1 %v1373_v17  ;;  %131 = vmatpush.msra.mxu0 %v114_v15  ;;  %v1405_v34 = vld [vmem:[#allocation7 + $0x28] sm:$0xff]  ;;  %v512_v35 = vadd.f32 1e-05, %v480_v30  ;;  %v481_v37 = vand.u32 2147483647, %v1402_v32  ;;  %v1412_v39 = vld [vmem:[#allocation7 + $0x20] sm:$0xff] }
  0x1c   :  { %955 = vmatpush.msra.mxu3 %v112_v18  ;;  %630 = vmatpush.msra.mxu2 %v1376_v19  ;;  %v1415_v40 = vld [vmem:[#allocation5 + $0x48] sm:$0xff]  ;;  %v100_v41 = vld [vmem:[#allocation5 + $0x30] sm:$0xff]  ;;  %v1418_v42 = vld [vmem:[#allocation7 + $0x18] sm:$0xff] }
  0x1d   :  { %245 = vmatpush.msra.mxu1 %v1379_v20  ;;  %132 = vmatpush.msra.mxu0 %v112_v18  ;;  %1005 = vlog2.f32 %v512_v35  ;;  %v1421_v43 = vld [vmem:[#allocation5 + $0x38] sm:$0xff]  ;;  %v513_v44 = vadd.f32 1e-05, %v481_v37  ;;  %v98_v45 = vld [vmem:[#allocation5 + $0x20] sm:$0xff]  ;;  %v1424_v46 = vld [vmem:[#allocation7 + $0x10] sm:$0xff] }
  0x1e   :  { %956 = vmatpush.msra.mxu3 %v110_v21  ;;  %631 = vmatpush.msra.mxu2 %v1382_v22  ;;  %v1426_v47 = vld [vmem:[#allocation2 + $0x10] sm:$0xff]  ;;  %v1429_v48 = vld [vmem:[#allocation5 + $0x28] sm:$0xff]  ;;  %v1435_v52 = vld [vmem:[#allocation5 + $0x18] sm:$0xff] }
  0x1f   :  { %246 = vmatpush.msra.mxu1 %v1385_v23  ;;  %133 = vmatpush.msra.mxu0 %v110_v21  ;;  %v96_v49 = vld [vmem:[#allocation5 + $0x10] sm:$0xff]  ;;  %v1432_v50 = vld [vmem:[#allocation7 + $0x8] sm:$0xff]  ;;  %1007 = vlog2.f32 %v513_v44  ;;  %v482_v53 = vand.u32 2147483647, %v1426_v47  ;;  %v94_v54 = vld [vmem:[#allocation5] sm:$0xff] }
  0x20   :  { %957 = vmatpush.msra.mxu3 %v108_v24  ;;  %632 = vmatpush.msra.mxu2 %v1388_v25  ;;  %v1439_v55 = vld [vmem:[#allocation7] sm:$0xff]  ;;  %v1445_v58 = vld [vmem:[#allocation5 + $0x8] sm:$0xff]  ;;  %v65_v60 = vld [vmem:[#allocation2 + $0x18] sm:$0xff] }
  0x21   :  { %247 = vmatpush.msra.mxu1 %v1391_v26  ;;  %134 = vmatpush.msra.mxu0 %v108_v24  ;;  %v1442_v57 = vld [vmem:[#allocation2 + $0xc0] sm:$0xff]  ;;  %v514_v59 = vadd.f32 1e-05, %v482_v53  ;;  %v483_v62 = vand.u32 2147483647, %v65_v60  ;;  %v1454_v0 = vld [vmem:[#allocation2 + $0xc8] sm:$0xff] }
  0x22   :  { %958 = vmatpush.msra.mxu3 %v106_v28  ;;  %633 = vmatpush.msra.mxu2 %v1396_v29  ;;  %v67_v12 = vld [vmem:[#allocation2 + $0x28] sm:$0xff]  ;;  %v1472_v18 = vld [vmem:[#allocation2 + $0xd8] sm:$0xff]  ;;  %v68_v21 = vld [vmem:[#allocation2 + $0x30] sm:$0xff] }
  0x23   :  { %248 = vmatpush.msra.mxu1 %v1400_v31  ;;  %135 = vmatpush.msra.mxu0 %v106_v28  ;;  %v1006_v51 = vpop.eup %1005  ;;  %1009 = vlog2.f32 %v514_v59  ;;  %v515_v2 = vadd.f32 1e-05, %v483_v62  ;;  %v485_v15 = vand.u32 2147483647, %v67_v12  ;;  %v486_v24 = vand.u32 2147483647, %v68_v21 }
  0x24   :  { %959 = vmatpush.msra.mxu3 %v104_v33  ;;  %634 = vmatpush.msra.mxu2 %v1405_v34  ;;  %v545_v56 = vmul.f32 0.6931472, %v1006_v51  ;;  %v69_v30 = vld [vmem:[#allocation2 + $0x38] sm:$0xff]  ;;  %v1486_v35 = vld [vmem:[#allocation2 + $0xe8] sm:$0xff]  ;;  %v70_v37 = vld [vmem:[#allocation2 + $0x40] sm:$0xff] }
  0x25   :  { %249 = vmatpush.msra.mxu1 %v1408_v36  ;;  %136 = vmatpush.msra.mxu0 %v104_v33  ;;  %v1008_v61 = vpop.eup %1007  ;;  %1011 = vlog2.f32 %v515_v2  ;;  %v518_v28 = vadd.f32 1e-05, %v486_v24  ;;  %v75_v53 = vld [vmem:[#allocation2 + $0x68] sm:$0xff]  ;;  %v76_v59 = vld [vmem:[#allocation2 + $0x70] sm:$0xff]  ;;  %v77_v2 = vld [vmem:[#allocation2 + $0x78] sm:$0xff] }
  0x26   :  { %960 = vmatpush.msra.mxu3 %v102_v38  ;;  %635 = vmatpush.msra.mxu2 %v1412_v39  ;;  %v547_v63 = vmul.f32 0.6931472, %v1008_v61  ;;  %v494_v61 = vand.u32 2147483647, %v76_v59 }
  0x27   :  { %250 = vmatpush.msra.mxu1 %v1415_v40  ;;  %137 = vmatpush.msra.mxu0 %v102_v38 }
  0x28   :  { %961 = vmatpush.msra.mxu3 %v100_v41  ;;  %636 = vmatpush.msra.mxu2 %v1418_v42 }
  0x29   :  { %251 = vmatpush.msra.mxu1 %v1421_v43  ;;  %138 = vmatpush.msra.mxu0 %v100_v41  ;;  %v1010_v5 = vpop.eup %1009 }
  0x2a   :  { %962 = vmatpush.msra.mxu3 %v98_v45  ;;  %637 = vmatpush.msra.mxu2 %v1424_v46  ;;  %v549_v9 = vmul.f32 0.6931472, %v1010_v5  ;;  %v495_v5 = vand.u32 2147483647, %v77_v2 }
  0x2b   :  { %252 = vmatpush.msra.mxu1 %v1429_v48  ;;  %139 = vmatpush.msra.mxu0 %v98_v45 }
  0x2c   :  { %963 = vmatpush.msra.mxu3 %v96_v49  ;;  %638 = vmatpush.msra.mxu2 %v1432_v50 }
  0x2d   :  { %253 = vmatpush.msra.mxu1 %v1435_v52  ;;  %140 = vmatpush.msra.mxu0 %v96_v49 }
  0x2e   :  { %964 = vmatpush.msra.mxu3 %v94_v54  ;;  %639 = vmatpush.msra.mxu2 %v1439_v55 }
  0x2f   :  { %214 = vmatmul.f32.vlgmr.msra.gmra.mxu3 %v1442_v57  ;;  %640 = vmatmul.f32.vlgmr.msra.gmra.mxu2 %v545_v56 }
  0x30   :  { %965 = vmatpush.msrb.mxu3 %v1347_v4  ;;  %254 = vmatpush.msra.mxu1 %v1445_v58  ;;  %v66_v4 = vld [vmem:[#allocation2 + $0x20] sm:$0xff] }
  0x31   :  { %255 = vmatmul.f32.vlgmr.msra.gmra.mxu1 %v1393_v27  ;;  %141 = vmatpush.msra.mxu0 %v94_v54 }
  0x32   :  { %966 = vmatpush.msrb.mxu3 %v1352_v7  ;;  %142 = vmatmul.f32.vlgmr.msra.gmra.mxu0 %v1393_v27  ;;  %v484_v7 = vand.u32 2147483647, %v66_v4  ;;  %v1479_v27 = vld [vmem:[#allocation2 + $0xe0] sm:$0xff] }
  0x34   :  { %967 = vmatpush.msrb.mxu3 %v1355_v8  ;;  %v1463_v8 = vld [vmem:[#allocation2 + $0xd0] sm:$0xff] }
  0x36   :  { %968 = vmatpush.msrb.mxu3 %v1361_v11  ;;  %v516_v11 = vadd.f32 1e-05, %v484_v7 }
  0x37   :  { %217 = vmatmul.f32.gmra.mxu3 %v1454_v0  ;;  %643 = vmatmul.f32.gmra.mxu2 %v547_v63  ;;  %v526_v63 = vadd.f32 1e-05, %v494_v61 }
  0x38   :  { %969 = vmatpush.msrb.mxu3 %v1367_v14  ;;  %v1012_v14 = vpop.eup %1011  ;;  %1013 = vlog2.f32 %v516_v11  ;;  %v78_v11 = vld [vmem:[#allocation2 + $0x80] sm:$0xff] }
  0x39   :  { %258 = vmatmul.f32.gmra.mxu1 %v1402_v32 }
  0x3a   :  { %970 = vmatpush.msrb.mxu3 %v1373_v17  ;;  %145 = vmatmul.f32.gmra.mxu0 %v1402_v32  ;;  %v551_v17 = vmul.f32 0.6931472, %v1012_v14  ;;  %v487_v32 = vand.u32 2147483647, %v69_v30  ;;  %v504_v14 = vand.u32 2147483647, %v1442_v57 }
  0x3c   :  { %971 = vmatpush.msrb.mxu3 %v1379_v20  ;;  %v517_v20 = vadd.f32 1e-05, %v485_v15  ;;  %v496_v15 = vand.u32 2147483647, %v78_v11 }
  0x3e   :  { %972 = vmatpush.msrb.mxu3 %v1385_v23  ;;  %v1014_v23 = vpop.eup %1013  ;;  %1015 = vlog2.f32 %v517_v20  ;;  %v536_v20 = vadd.f32 1e-05, %v504_v14 }
  0x3f   :  { %220 = vmatmul.f32.gmra.mxu3 %v1463_v8  ;;  %646 = vmatmul.f32.gmra.mxu2 %v549_v9  ;;  %1017 = vlog2.f32 %v518_v28  ;;  %v527_v9 = vadd.f32 1e-05, %v495_v5  ;;  %v505_v28 = vand.u32 2147483647, %v1454_v0  ;;  %v1540_v5 = vld [vmem:[#allocation2 + $0xa8] sm:$0xff] }
  0x40   :  { %973 = vmatpush.msrb.mxu3 %v1391_v26  ;;  %v553_v26 = vmul.f32 0.6931472, %v1014_v23  ;;  %v1516_v23 = vld [vmem:[#allocation2 + $0x88] sm:$0xff] }
  0x41   :  { %261 = vmatmul.f32.gmra.mxu1 %v1426_v47 }
  0x42   :  { %148 = vmatmul.f32.gmra.mxu0 %v1426_v47  ;;  %974 = vmatpush.msrb.mxu3 %v1400_v31 }
  0x44   :  { %975 = vmatpush.msrb.mxu3 %v1408_v36  ;;  %v1016_v31 = vpop.eup %1015  ;;  %v519_v36 = vadd.f32 1e-05, %v487_v32  ;;  %v537_v32 = vadd.f32 1e-05, %v505_v28 }
  0x45   :  { %v555_v33 = vmul.f32 0.6931472, %v1016_v31  ;;  %v1018_v38 = vpop.eup %1017  ;;  %v1521_v31 = vld [vmem:[#allocation2 + $0x90] sm:$0xff] }
  0x46   :  { %976 = vmatpush.msrb.mxu3 %v1415_v40  ;;  %1019 = vlog2.f32 %v519_v36  ;;  %v1493_v40 = vld [vmem:[#allocation2 + $0xf0] sm:$0xff] }
  0x47   :  { %223 = vmatmul.f32.gmra.mxu3 %v1472_v18  ;;  %649 = vmatmul.f32.gmra.mxu2 %v551_v17 }
  0x48   :  { %977 = vmatpush.msrb.mxu3 %v1421_v43  ;;  %v1500_v43 = vld [vmem:[#allocation2 + $0xf8] sm:$0xff] }
  0x49   :  { %264 = vmatmul.f32.gmra.mxu1 %v65_v60 }
  0x4a   :  { %151 = vmatmul.f32.gmra.mxu0 %v65_v60  ;;  %978 = vmatpush.msrb.mxu3 %v1429_v48 }
  0x4c   :  { %979 = vmatpush.msrb.mxu3 %v1435_v52  ;;  %v1020_v41 = vpop.eup %1019 }
  0x4e   :  { %980 = vmatpush.msrb.mxu3 %v1445_v58 }
  0x4f   :  { %226 = vmatmul.f32.gmra.mxu3 %v1479_v27  ;;  %652 = vmatmul.f32.gmra.mxu2 %v553_v26  ;;  %v497_v26 = vand.u32 2147483647, %v1516_v23 }
  0x50   :  { %981 = vmatpush.msra.mxu3 %v1342_v1  ;;  %v488_v1 = vand.u32 2147483647, %v70_v37 }
  0x51   :  { %267 = vmatmul.f32.gmra.mxu1 %v66_v4 }
  0x52   :  { %154 = vmatmul.f32.gmra.mxu0 %v66_v4  ;;  %982 = vmatpush.msra.mxu3 %v1345_v3  ;;  %v557_v3 = vmul.f32 0.6931472, %v1018_v38  ;;  %v506_v38 = vand.u32 2147483647, %v1463_v8 }
  0x54   :  { %983 = vmatpush.msra.mxu3 %v1350_v6  ;;  %v520_v6 = vadd.f32 1e-05, %v488_v1 }
  0x56   :  { %984 = vmatpush.msra.mxu3 %v1358_v10  ;;  %v71_v10 = vld [vmem:[#allocation2 + $0x48] sm:$0xff]  ;;  %1021 = vlog2.f32 %v520_v6  ;;  %v1526_v6 = vld [vmem:[#allocation2 + $0x98] sm:$0xff] }
  0x57   :  { %229 = vmatmul.f32.gmra.mxu3 %v1486_v35  ;;  %655 = vmatmul.f32.gmra.mxu2 %v555_v33 }
  0x58   :  { %985 = vmatpush.msra.mxu3 %v1364_v13  ;;  %v489_v13 = vand.u32 2147483647, %v71_v10 }
  0x59   :  { %270 = vmatmul.f32.gmra.mxu1 %v67_v12 }
  0x5a   :  { %157 = vmatmul.f32.gmra.mxu0 %v67_v12  ;;  %986 = vmatpush.msra.mxu3 %v1370_v16  ;;  %v559_v16 = vmul.f32 0.6931472, %v1020_v41  ;;  %v538_v41 = vadd.f32 1e-05, %v506_v38 }
  0x5c   :  { %987 = vmatpush.msra.mxu3 %v1376_v19  ;;  %v521_v19 = vadd.f32 1e-05, %v489_v13  ;;  %v1022_v44 = vpop.eup %1021 }
  0x5e   :  { %988 = vmatpush.msra.mxu3 %v1382_v22  ;;  %v72_v22 = vld [vmem:[#allocation2 + $0x50] sm:$0xff]  ;;  %1023 = vlog2.f32 %v521_v19 }
  0x5f   :  { %232 = vmatmul.f32.gmra.mxu3 %v1493_v40  ;;  %658 = vmatmul.f32.gmra.mxu2 %v557_v3 }
  0x60   :  { %989 = vmatpush.msra.mxu3 %v1388_v25  ;;  %v490_v25 = vand.u32 2147483647, %v72_v22 }
  0x61   :  { %273 = vmatmul.f32.gmra.mxu1 %v68_v21 }
  0x62   :  { %160 = vmatmul.f32.gmra.mxu0 %v68_v21  ;;  %990 = vmatpush.msra.mxu3 %v1396_v29  ;;  %v561_v29 = vmul.f32 0.6931472, %v1022_v44  ;;  %v528_v21 = vadd.f32 1e-05, %v496_v15  ;;  %v499_v44 = vand.u32 2147483647, %v1526_v6 }
  0x64   :  { %991 = vmatpush.msra.mxu3 %v1405_v34  ;;  %v522_v34 = vadd.f32 1e-05, %v490_v25  ;;  %v1024_v45 = vpop.eup %1023 }
  0x65   :  { %v563_v47 = vmul.f32 0.6931472, %v1024_v45 }
  0x66   :  { %992 = vmatpush.msra.mxu3 %v1412_v39  ;;  %v73_v39 = vld [vmem:[#allocation2 + $0x58] sm:$0xff]  ;;  %1025 = vlog2.f32 %v522_v34 }
  0x67   :  { %235 = vmatmul.f32.gmra.mxu3 %v1500_v43  ;;  %661 = vmatmul.f32.gmra.mxu2 %v559_v16 }
  0x68   :  { %993 = vmatpush.msra.mxu3 %v1418_v42  ;;  %v491_v42 = vand.u32 2147483647, %v73_v39 }
  0x69   :  { %276 = vmatmul.f32.gmra.mxu1 %v69_v30 }
  0x6a   :  { %163 = vmatmul.f32.gmra.mxu0 %v69_v30  ;;  %994 = vmatpush.msra.mxu3 %v1424_v46  ;;  %v523_v48 = vadd.f32 1e-05, %v491_v42  ;;  %v74_v46 = vld [vmem:[#allocation2 + $0x60] sm:$0xff]  ;;  %v529_v30 = vadd.f32 1e-05, %v497_v26 }
  0x6b   :  { %v531_v42 = vadd.f32 1e-05, %v499_v44 }
  0x6c   :  { %995 = vmatpush.msra.mxu3 %v1432_v50  ;;  %v1026_v49 = vpop.eup %1025  ;;  %1027 = vlog2.f32 %v523_v48  ;;  %v492_v50 = vand.u32 2147483647, %v74_v46 }
  0x6d   :  { %v565_v51 = vmul.f32 0.6931472, %v1026_v49 }
  0x6e   :  { %996 = vmatpush.msra.mxu3 %v1439_v55  ;;  %v524_v52 = vadd.f32 1e-05, %v492_v50  ;;  %v493_v55 = vand.u32 2147483647, %v75_v53 }
  0x6f   :  { %327 = vmatmul.f32.vlgmr.msrb.gmra.mxu3 %v1442_v57  ;;  %664 = vmatmul.f32.gmra.mxu2 %v561_v29 }
  0x70   :  { %1029 = vlog2.f32 %v524_v52  ;;  %v525_v58 = vadd.f32 1e-05, %v493_v55  ;;  %v508_v55 = vand.u32 2147483647, %v1479_v27 }
  0x71   :  { %279 = vmatmul.f32.gmra.mxu1 %v70_v37 }
  0x72   :  { %166 = vmatmul.f32.gmra.mxu0 %v70_v37  ;;  %v1028_v54 = vpop.eup %1027  ;;  %1031 = vlog2.f32 %v525_v58  ;;  %v498_v37 = vand.u32 2147483647, %v1521_v31 }
  0x73   :  { %v567_v56 = vmul.f32 0.6931472, %v1028_v54  ;;  %1033 = vlog2.f32 %v526_v63 }
  0x74   :  { %1035 = vlog2.f32 %v527_v9  ;;  %v530_v3 = vadd.f32 1e-05, %v498_v37 }
  0x75   :  { %1037 = vlog2.f32 %v536_v20 }
  0x76   :  { %v1030_v60 = vpop.eup %1029  ;;  %1039 = vlog2.f32 %v528_v21 }
  0x77   :  { %330 = vmatmul.f32.gmra.mxu3 %v1454_v0  ;;  %667 = vmatmul.f32.gmra.mxu2 %v563_v47  ;;  %v569_v62 = vmul.f32 0.6931472, %v1030_v60  ;;  %1041 = vlog2.f32 %v529_v30  ;;  %v1532_v47 = vld [vmem:[#allocation2 + $0xa0] sm:$0xff] }
  0x78   :  { %v1032_v4 = vpop.eup %1031  ;;  %1043 = vlog2.f32 %v537_v32  ;;  %v500_v54 = vand.u32 2147483647, %v1532_v47 }
  0x79   :  { %282 = vmatmul.f32.gmra.mxu1 %v71_v10  ;;  %v571_v7 = vmul.f32 0.6931472, %v1032_v4  ;;  %v1034_v12 = vpop.eup %1033  ;;  %1045 = vlog2.f32 %v530_v3 }
  0x7a   :  { %169 = vmatmul.f32.gmra.mxu0 %v71_v10  ;;  %v573_v17 = vmul.f32 0.6931472, %v1034_v12  ;;  %v1036_v24 = vpop.eup %1035  ;;  %v532_v4 = vadd.f32 1e-05, %v500_v54 }
  0x7b   :  { %v575_v57 = vmul.f32 0.6931472, %v1036_v24  ;;  %v1038_v33 = vpop.eup %1037  ;;  %v509_v24 = vand.u32 2147483647, %v1486_v35 }
  0x7c   :  { %v1040_v36 = vpop.eup %1039  ;;  %v593_v0 = vmul.f32 0.6931472, %v1038_v33 }
  0x7d   :  { %v577_v1 = vmul.f32 0.6931472, %v1040_v36  ;;  %v1042_v13 = vpop.eup %1041 }
  0x7f   :  { %333 = vmatmul.f32.gmra.mxu3 %v1463_v8  ;;  %670 = vmatmul.f32.gmra.mxu2 %v565_v51  ;;  %v507_v8 = vand.u32 2147483647, %v1472_v18 }
  0x81   :  { %285 = vmatmul.f32.gmra.mxu1 %v72_v22  ;;  %v539_v49 = vadd.f32 1e-05, %v507_v8  ;;  %v510_v8 = vand.u32 2147483647, %v1493_v40 }
  0x82   :  { %172 = vmatmul.f32.gmra.mxu0 %v72_v22  ;;  %v1044_v22 = vpop.eup %1043 }
  0x83   :  { %v595_v45 = vmul.f32 0.6931472, %v1044_v22  ;;  %v1046_v48 = vpop.eup %1045 }
  0x87   :  { %336 = vmatmul.f32.gmra.mxu3 %v1472_v18  ;;  %673 = vmatmul.f32.gmra.mxu2 %v567_v56 }
  0x89   :  { %288 = vmatmul.f32.gmra.mxu1 %v73_v39 }
  0x8a   :  { %175 = vmatmul.f32.gmra.mxu0 %v73_v39  ;;  %v579_v39 = vmul.f32 0.6931472, %v1042_v13 }
  0x8f   :  { %339 = vmatmul.f32.gmra.mxu3 %v1479_v27  ;;  %676 = vmatmul.f32.gmra.mxu2 %v569_v62  ;;  %v581_v62 = vmul.f32 0.6931472, %v1046_v48  ;;  %v540_v27 = vadd.f32 1e-05, %v508_v55 }
  0x91   :  { %291 = vmatmul.f32.gmra.mxu1 %v74_v46 }
  0x92   :  { %178 = vmatmul.f32.gmra.mxu0 %v74_v46 }
  0x97   :  { %342 = vmatmul.f32.gmra.mxu3 %v1486_v35  ;;  %679 = vmatmul.f32.gmra.mxu2 %v571_v7 }
  0x99   :  { %294 = vmatmul.f32.gmra.mxu1 %v75_v53 }
  0x9a   :  { %181 = vmatmul.f32.gmra.mxu0 %v75_v53 }
  0x9f   :  { %345 = vmatmul.f32.gmra.mxu3 %v1493_v40  ;;  %682 = vmatmul.f32.gmra.mxu2 %v573_v17 }
  0xa1   :  { %297 = vmatmul.f32.gmra.mxu1 %v76_v59 }
  0xa2   :  { %184 = vmatmul.f32.gmra.mxu0 %v76_v59 }
  0xa7   :  { %348 = vmatmul.f32.gmra.mxu3 %v1500_v43  ;;  %685 = vmatmul.f32.gmra.mxu2 %v575_v57 }
  0xa9   :  { %300 = vmatmul.f32.gmra.mxu1 %v77_v2 }
  0xaa   :  { %187 = vmatmul.f32.gmra.mxu0 %v77_v2 }
  0xae   :  { %v256_v10 = vpop.f32.mrf.mxu1 }
  0xaf   :  { %688 = vmatmul.f32.gmra.mxu2 %v577_v1  ;;  %712 = vmatmul.f32.vlgmr.msra.gmra.mxu3 %v593_v0  ;;  %v352_v16 = vmul.f32 0.5, %v256_v10  ;;  %v143_v19 = vpop.f32.mrf.mxu0  ;;  %v1548_v0 = vld [vmem:[#allocation2 + $0xb0] sm:$0xff]  ;;  %v541_v10 = vadd.f32 1e-05, %v509_v24 }
  0xb0   :  { %v502_v44 = vand.u32 2147483647, %v1548_v0 }
  0xb1   :  { %1047 = vtanh.f32 %v352_v16  ;;  %303 = vmatmul.f32.gmra.mxu1 %v78_v11 }
  0xb2   :  { %v1530_v25 = vpop.f32.mrf.mxu3  ;;  %v641_v29 = vpop.f32.mrf.mxu2  ;;  %190 = vmatmul.f32.gmra.mxu0 %v78_v11  ;;  %1049 = vlog2.f32 %v538_v41 }
  0xb3   :  { %v737_v34 = vmul.f32 1.442695, %v641_v29 }
  0xb5   :  { %1051 = vpow2.f32 %v737_v34 }
  0xb6   :  { %v259_v46 = vpop.f32.mrf.mxu1  ;;  %1053 = vlog2.f32 %v531_v42 }
  0xb7   :  { %v1048_v50 = vpop.eup %1047  ;;  %691 = vmatmul.f32.gmra.mxu2 %v579_v39  ;;  %715 = vmatmul.f32.gmra.mxu3 %v595_v45  ;;  %v353_v51 = vmul.f32 0.5, %v259_v46  ;;  %v146_v18 = vpop.f32.mrf.mxu0 }
  0xb8   :  { %v1050_v52 = vpop.eup %1049  ;;  %v416_v53 = vadd.f32 1.0, %v1048_v50  ;;  %v534_v50 = vadd.f32 1e-05, %v502_v44 }
  0xb9   :  { %1055 = vtanh.f32 %v353_v51  ;;  %306 = vmatmul.f32.gmra.mxu1 %v1516_v23  ;;  %v597_v63 = vmul.f32 0.6931472, %v1050_v52  ;;  %v1556_v51 = vld [vmem:[#allocation2 + $0xb8] sm:$0xff] }
  0xba   :  { %v448_v56 = vmul.f32 0.5, %v416_v53  ;;  %v1537_v58 = vpop.f32.mrf.mxu3  ;;  %v644_v59 = vpop.f32.mrf.mxu2  ;;  %193 = vmatmul.f32.gmra.mxu0 %v1516_v23  ;;  %1057 = vlog2.f32 %v539_v49  ;;  %v501_v23 = vand.u32 2147483647, %v1540_v5  ;;  %v542_v53 = vadd.f32 1e-05, %v510_v8 }
  0xbb   :  { %v1052_v60 = vpop.eup %1051  ;;  %v739_v61 = vmul.f32 1.442695, %v644_v59 }
  0xbc   :  { %v801_v2 = vsub.f32 %v143_v19, %v1052_v60  ;;  %v1054_v7 = vpop.eup %1053  ;;  %v533_v38 = vadd.f32 1e-05, %v501_v23 }
  0xbd   :  { %1059 = vpow2.f32 %v739_v61  ;;  %v583_v33 = vmul.f32 0.6931472, %v1054_v7  ;;  %v503_v61 = vand.u32 2147483647, %v1556_v51 }
  0xbe   :  { %v833_v9 = vmul.f32 %v801_v2, %v448_v56  ;;  %v262_v11 = vpop.f32.mrf.mxu1  ;;  %1061 = vlog2.f32 %v532_v4 }
  0xbf   :  { %v1056_v12 = vpop.eup %1055  ;;  %694 = vmatmul.f32.gmra.mxu2 %v581_v62  ;;  %718 = vmatmul.f32.gmra.mxu3 %v597_v63  ;;  %v354_v14 = vmul.f32 0.5, %v262_v11  ;;  %v149_v15 = vpop.f32.mrf.mxu0  ;;  %v511_v62 = vand.u32 2147483647, %v1500_v43 }
  0xc0   :  { %v1058_v17 = vpop.eup %1057  ;;  %v417_v20 = vadd.f32 1.0, %v1056_v12  ;;  %v865_v21 = vadd.f32 %v1052_v60, %v833_v9 }
  0xc1   :  { %1063 = vtanh.f32 %v354_v14  ;;  %309 = vmatmul.f32.gmra.mxu1 %v1521_v31  ;;  %v599_v36 = vmul.f32 0.6931472, %v1058_v17  ;;  %v535_v14 = vadd.f32 1e-05, %v503_v61 }
  0xc2   :  { %v449_v26 = vmul.f32 0.5, %v417_v20  ;;  %897 = vst [vmem:[#allocation8] sm:$0xff] %v865_v21  ;;  %v1545_v28 = vpop.f32.mrf.mxu3  ;;  %v647_v57 = vpop.f32.mrf.mxu2  ;;  %196 = vmatmul.f32.gmra.mxu0 %v1521_v31  ;;  %1065 = vlog2.f32 %v540_v27  ;;  %v543_v21 = vadd.f32 1e-05, %v511_v62 }
  0xc3   :  { %v1060_v30 = vpop.eup %1059  ;;  %v741_v32 = vmul.f32 1.442695, %v647_v57 }
  0xc4   :  { %v802_v37 = vsub.f32 %v146_v18, %v1060_v30  ;;  %v1062_v1 = vpop.eup %1061 }
  0xc5   :  { %1067 = vpow2.f32 %v741_v32  ;;  %v585_v48 = vmul.f32 0.6931472, %v1062_v1 }
  0xc6   :  { %v834_v3 = vmul.f32 %v802_v37, %v449_v26  ;;  %v265_v35 = vpop.f32.mrf.mxu1  ;;  %1069 = vlog2.f32 %v533_v38 }
  0xc7   :  { %v1064_v41 = vpop.eup %1063  ;;  %697 = vmatmul.f32.gmra.mxu2 %v583_v33  ;;  %721 = vmatmul.f32.gmra.mxu3 %v599_v36  ;;  %v355_v13 = vmul.f32 0.5, %v265_v35  ;;  %v152_v16 = vpop.f32.mrf.mxu0 }
  0xc8   :  { %v1066_v31 = vpop.eup %1065  ;;  %v418_v19 = vadd.f32 1.0, %v1064_v41  ;;  %v866_v22 = vadd.f32 %v1060_v30, %v834_v3 }
  0xc9   :  { %1071 = vtanh.f32 %v355_v13  ;;  %312 = vmatmul.f32.gmra.mxu1 %v1526_v6  ;;  %v601_v46 = vmul.f32 0.6931472, %v1066_v31 }
  0xca   :  { %v450_v29 = vmul.f32 0.5, %v418_v19  ;;  %898 = vst [vmem:[#allocation8 + $0x8] sm:$0xff] %v866_v22  ;;  %v1553_v34 = vpop.f32.mrf.mxu3  ;;  %v650_v39 = vpop.f32.mrf.mxu2  ;;  %199 = vmatmul.f32.gmra.mxu0 %v1526_v6  ;;  %1073 = vlog2.f32 %v541_v10 }
  0xcb   :  { %v1068_v45 = vpop.eup %1067  ;;  %v743_v42 = vmul.f32 1.442695, %v650_v39 }
  0xcc   :  { %v803_v49 = vsub.f32 %v149_v15, %v1068_v45  ;;  %v1070_v18 = vpop.eup %1069 }
  0xcd   :  { %1075 = vpow2.f32 %v743_v42  ;;  %v587_v11 = vmul.f32 0.6931472, %v1070_v18 }
  0xce   :  { %v835_v52 = vmul.f32 %v803_v49, %v450_v29  ;;  %v268_v40 = vpop.f32.mrf.mxu1  ;;  %1077 = vlog2.f32 %v534_v50 }
  0xcf   :  { %v1072_v54 = vpop.eup %1071  ;;  %700 = vmatmul.f32.gmra.mxu2 %v585_v48  ;;  %724 = vmatmul.f32.gmra.mxu3 %v601_v46  ;;  %v356_v55 = vmul.f32 0.5, %v268_v40  ;;  %v155_v56 = vpop.f32.mrf.mxu0 }
  0xd0   :  { %v1074_v6 = vpop.eup %1073  ;;  %v419_v59 = vadd.f32 1.0, %v1072_v54  ;;  %v867_v60 = vadd.f32 %v1068_v45, %v835_v52 }
  0xd1   :  { %1079 = vtanh.f32 %v356_v55  ;;  %315 = vmatmul.f32.gmra.mxu1 %v1532_v47  ;;  %v603_v27 = vmul.f32 0.6931472, %v1074_v6 }
  0xd2   :  { %v451_v63 = vmul.f32 0.5, %v419_v59  ;;  %899 = vst [vmem:[#allocation8 + $0x10] sm:$0xff] %v867_v60  ;;  %v1561_v2 = vpop.f32.mrf.mxu3  ;;  %v653_v4 = vpop.f32.mrf.mxu2  ;;  %202 = vmatmul.f32.gmra.mxu0 %v1532_v47  ;;  %1081 = vlog2.f32 %v542_v53 }
  0xd3   :  { %v1076_v7 = vpop.eup %1075  ;;  %v745_v9 = vmul.f32 1.442695, %v653_v4 }
  0xd4   :  { %v804_v12 = vsub.f32 %v152_v16, %v1076_v7  ;;  %v1078_v15 = vpop.eup %1077 }
  0xd5   :  { %1083 = vpow2.f32 %v745_v9  ;;  %v589_v38 = vmul.f32 0.6931472, %v1078_v15 }
  0xd6   :  { %v836_v17 = vmul.f32 %v804_v12, %v451_v63  ;;  %v271_v20 = vpop.f32.mrf.mxu1  ;;  %1085 = vlog2.f32 %v535_v14 }
  0xd7   :  { %v1080_v43 = vpop.eup %1079  ;;  %703 = vmatmul.f32.gmra.mxu2 %v587_v11  ;;  %727 = vmatmul.f32.gmra.mxu3 %v603_v27  ;;  %v357_v23 = vmul.f32 0.5, %v271_v20  ;;  %v158_v24 = vpop.f32.mrf.mxu0 }
  0xd8   :  { %v1082_v26 = vpop.eup %1081  ;;  %v420_v57 = vadd.f32 1.0, %v1080_v43  ;;  %v868_v47 = vadd.f32 %v1076_v7, %v836_v17 }
  0xd9   :  { %1087 = vtanh.f32 %v357_v23  ;;  %318 = vmatmul.f32.gmra.mxu1 %v1540_v5  ;;  %v605_v1 = vmul.f32 0.6931472, %v1082_v26 }
  0xda   :  { %v452_v30 = vmul.f32 0.5, %v420_v57  ;;  %900 = vst [vmem:[#allocation8 + $0x18] sm:$0xff] %v868_v47  ;;  %v1565_v32 = vpop.f32.mrf.mxu3  ;;  %v656_v33 = vpop.f32.mrf.mxu2  ;;  %205 = vmatmul.f32.gmra.mxu0 %v1540_v5  ;;  %1089 = vlog2.f32 %v543_v21 }
  0xdb   :  { %v1084_v36 = vpop.eup %1083  ;;  %v747_v37 = vmul.f32 1.442695, %v656_v33 }
  0xdc   :  { %v805_v3 = vsub.f32 %v155_v56, %v1084_v36  ;;  %v1086_v35 = vpop.eup %1085 }
  0xdd   :  { %1091 = vpow2.f32 %v747_v37  ;;  %v591_v42 = vmul.f32 0.6931472, %v1086_v35 }
  0xde   :  { %v837_v10 = vmul.f32 %v805_v3, %v452_v30  ;;  %v274_v41 = vpop.f32.mrf.mxu1 }
  0xdf   :  { %v1088_v13 = vpop.eup %1087  ;;  %706 = vmatmul.f32.gmra.mxu2 %v589_v38  ;;  %730 = vmatmul.f32.gmra.mxu3 %v605_v1  ;;  %v358_v16 = vmul.f32 0.5, %v274_v41  ;;  %v161_v31 = vpop.f32.mrf.mxu0 }
  0xe0   :  { %v1090_v19 = vpop.eup %1089  ;;  %v421_v22 = vadd.f32 1.0, %v1088_v13  ;;  %v869_v44 = vadd.f32 %v1084_v36, %v837_v10 }
  0xe1   :  { %1093 = vtanh.f32 %v358_v16  ;;  %321 = vmatmul.f32.gmra.mxu1 %v1548_v0  ;;  %v607_v48 = vmul.f32 0.6931472, %v1090_v19 }
  0xe2   :  { %v453_v5 = vmul.f32 0.5, %v421_v22  ;;  %901 = vst [vmem:[#allocation8 + $0x20] sm:$0xff] %v869_v44  ;;  %v1569_v8 = vpop.f32.mrf.mxu3  ;;  %v659_v29 = vpop.f32.mrf.mxu2  ;;  %208 = vmatmul.f32.gmra.mxu0 %v1548_v0 }
  0xe3   :  { %v1092_v39 = vpop.eup %1091  ;;  %v749_v45 = vmul.f32 1.442695, %v659_v29 }
  0xe4   :  { %v806_v46 = vsub.f32 %v158_v24, %v1092_v39 }
  0xe5   :  { %1095 = vpow2.f32 %v749_v45 }
  0xe6   :  { %v838_v49 = vmul.f32 %v806_v46, %v453_v5  ;;  %v277_v50 = vpop.f32.mrf.mxu1 }
  0xe7   :  { %v1094_v18 = vpop.eup %1093  ;;  %709 = vmatmul.f32.gmra.mxu2 %v591_v42  ;;  %733 = vmatmul.f32.gmra.mxu3 %v607_v48  ;;  %v359_v52 = vmul.f32 0.5, %v277_v50  ;;  %v164_v40 = vpop.f32.mrf.mxu0 }
  0xe8   :  { %v422_v53 = vadd.f32 1.0, %v1094_v18  ;;  %v870_v54 = vadd.f32 %v1092_v39, %v838_v49 }
  0xe9   :  { %1097 = vtanh.f32 %v359_v52  ;;  %324 = vmatmul.f32.gmra.mxu1 %v1556_v51 }
  0xea   :  { %v454_v55 = vmul.f32 0.5, %v422_v53  ;;  %902 = vst [vmem:[#allocation8 + $0x28] sm:$0xff] %v870_v54  ;;  %v1573_v0 = vpop.f32.mrf.mxu3  ;;  %v662_v56 = vpop.f32.mrf.mxu2  ;;  %211 = vmatmul.f32.gmra.mxu0 %v1556_v51 }
  0xeb   :  { %v1096_v6 = vpop.eup %1095  ;;  %v751_v59 = vmul.f32 1.442695, %v662_v56 }
  0xec   :  { %v807_v60 = vsub.f32 %v161_v31, %v1096_v6 }
  0xed   :  { %1099 = vpow2.f32 %v751_v59 }
  0xee   :  { %v839_v61 = vmul.f32 %v807_v60, %v454_v55  ;;  %v280_v62 = vpop.f32.mrf.mxu1 }
  0xef   :  { %v1098_v63 = vpop.eup %1097  ;;  %v360_v4 = vmul.f32 0.5, %v280_v62  ;;  %v167_v7 = vpop.f32.mrf.mxu0 }
  0xf0   :  { %v423_v9 = vadd.f32 1.0, %v1098_v63  ;;  %v871_v11 = vadd.f32 %v1096_v6, %v839_v61 }
  0xf1   :  { %1101 = vtanh.f32 %v360_v4 }
  0xf2   :  { %v455_v27 = vmul.f32 0.5, %v423_v9  ;;  %903 = vst [vmem:[#allocation8 + $0x30] sm:$0xff] %v871_v11  ;;  %v1576_v12 = vpop.f32.mrf.mxu3  ;;  %v665_v14 = vpop.f32.mrf.mxu2 }
  0xf3   :  { %v1100_v15 = vpop.eup %1099  ;;  %v753_v17 = vmul.f32 1.442695, %v665_v14 }
  0xf4   :  { %v808_v51 = vsub.f32 %v164_v40, %v1100_v15 }
  0xf5   :  { %1103 = vpow2.f32 %v753_v17 }
  0xf6   :  { %v840_v20 = vmul.f32 %v808_v51, %v455_v27  ;;  %v283_v21 = vpop.f32.mrf.mxu1 }
  0xf7   :  { %v1102_v43 = vpop.eup %1101  ;;  %v361_v23 = vmul.f32 0.5, %v283_v21  ;;  %v170_v24 = vpop.f32.mrf.mxu0 }
  0xf8   :  { %v424_v26 = vadd.f32 1.0, %v1102_v43  ;;  %v872_v57 = vadd.f32 %v1100_v15, %v840_v20 }
  0xf9   :  { %1105 = vtanh.f32 %v361_v23 }
  0xfa   :  { %904 = vst [vmem:[#allocation8 + $0x38] sm:$0xff] %v872_v57  ;;  %v1578_v47 = vpop.f32.mrf.mxu3  ;;  %v668_v30 = vpop.f32.mrf.mxu2  ;;  %v456_v33 = vmul.f32 0.5, %v424_v26 }
  0xfb   :  { %v755_v36 = vmul.f32 1.442695, %v668_v30  ;;  %v1104_v37 = vpop.eup %1103 }
  0xfc   :  { %v809_v38 = vsub.f32 %v167_v7, %v1104_v37 }
  0xfd   :  { %1107 = vpow2.f32 %v755_v36 }
  0xfe   :  { %v286_v1 = vpop.f32.mrf.mxu1  ;;  %v841_v35 = vmul.f32 %v809_v38, %v456_v33 }
  0xff   :  { %v1106_v3 = vpop.eup %1105  ;;  %v362_v10 = vmul.f32 0.5, %v286_v1  ;;  %v173_v41 = vpop.f32.mrf.mxu0 }
 0x100   :  { %v425_v13 = vadd.f32 1.0, %v1106_v3  ;;  %v873_v16 = vadd.f32 %v1104_v37, %v841_v35 }
 0x101   :  { %1109 = vtanh.f32 %v362_v10 }
 0x102   :  { %v1580_v31 = vpop.f32.mrf.mxu3  ;;  %v671_v19 = vpop.f32.mrf.mxu2  ;;  %v457_v22 = vmul.f32 0.5, %v425_v13  ;;  %905 = vst [vmem:[#allocation8 + $0x40] sm:$0xff] %v873_v16 }
 0x103   :  { %v757_v44 = vmul.f32 1.442695, %v671_v19  ;;  %v1108_v5 = vpop.eup %1107 }
 0x104   :  { %v810_v29 = vsub.f32 %v170_v24, %v1108_v5 }
 0x105   :  { %1111 = vpow2.f32 %v757_v44 }
 0x106   :  { %v289_v39 = vpop.f32.mrf.mxu1  ;;  %v842_v42 = vmul.f32 %v810_v29, %v457_v22 }
 0x107   :  { %v1110_v45 = vpop.eup %1109  ;;  %v363_v48 = vmul.f32 0.5, %v289_v39  ;;  %v176_v46 = vpop.f32.mrf.mxu0 }
 0x108   :  { %v426_v49 = vadd.f32 1.0, %v1110_v45  ;;  %v874_v50 = vadd.f32 %v1108_v5, %v842_v42 }
 0x109   :  { %1113 = vtanh.f32 %v363_v48 }
 0x10a   :  { %v1582_v18 = vpop.f32.mrf.mxu3  ;;  %v674_v52 = vpop.f32.mrf.mxu2  ;;  %v458_v40 = vmul.f32 0.5, %v426_v49  ;;  %906 = vst [vmem:[#allocation8 + $0x48] sm:$0xff] %v874_v50 }
 0x10b   :  { %v759_v53 = vmul.f32 1.442695, %v674_v52  ;;  %v1112_v54 = vpop.eup %1111 }
 0x10c   :  { %v811_v55 = vsub.f32 %v173_v41, %v1112_v54 }
 0x10d   :  { %1115 = vpow2.f32 %v759_v53 }
 0x10e   :  { %v292_v56 = vpop.f32.mrf.mxu1  ;;  %v843_v59 = vmul.f32 %v811_v55, %v458_v40  ;;  %v376_v55 = vmul.f32 0.5, %v1576_v12  ;;  %v377_v12 = vmul.f32 0.5, %v1578_v47 }
 0x10f   :  { %v1114_v6 = vpop.eup %1113  ;;  %v364_v60 = vmul.f32 0.5, %v292_v56  ;;  %v179_v61 = vpop.f32.mrf.mxu0 }
 0x110   :  { %v427_v62 = vadd.f32 1.0, %v1114_v6  ;;  %v875_v63 = vadd.f32 %v1112_v54, %v843_v59 }
 0x111   :  { %1117 = vtanh.f32 %v364_v60 }
 0x112   :  { %v1584_v4 = vpop.f32.mrf.mxu3  ;;  %v677_v7 = vpop.f32.mrf.mxu2  ;;  %v459_v9 = vmul.f32 0.5, %v427_v62  ;;  %907 = vst [vmem:[#allocation8 + $0x50] sm:$0xff] %v875_v63 }
 0x113   :  { %v761_v11 = vmul.f32 1.442695, %v677_v7  ;;  %v1116_v27 = vpop.eup %1115 }
 0x114   :  { %v812_v14 = vsub.f32 %v176_v46, %v1116_v27 }
 0x115   :  { %1119 = vpow2.f32 %v761_v11 }
 0x116   :  { %v295_v15 = vpop.f32.mrf.mxu1  ;;  %v844_v51 = vmul.f32 %v812_v14, %v459_v9 }
 0x117   :  { %v1118_v17 = vpop.eup %1117  ;;  %v365_v20 = vmul.f32 0.5, %v295_v15  ;;  %v182_v21 = vpop.f32.mrf.mxu0 }
 0x118   :  { %v428_v43 = vadd.f32 1.0, %v1118_v17  ;;  %v876_v23 = vadd.f32 %v1116_v27, %v844_v51 }
 0x119   :  { %1121 = vtanh.f32 %v365_v20 }
 0x11a   :  { %v1586_v24 = vpop.f32.mrf.mxu3  ;;  %v680_v26 = vpop.f32.mrf.mxu2  ;;  %v460_v57 = vmul.f32 0.5, %v428_v43  ;;  %908 = vst [vmem:[#allocation8 + $0x58] sm:$0xff] %v876_v23 }
 0x11b   :  { %v763_v30 = vmul.f32 1.442695, %v680_v26  ;;  %v1120_v33 = vpop.eup %1119 }
 0x11c   :  { %v813_v36 = vsub.f32 %v179_v61, %v1120_v33 }
 0x11d   :  { %1123 = vpow2.f32 %v763_v30 }
 0x11e   :  { %v298_v37 = vpop.f32.mrf.mxu1  ;;  %v845_v1 = vmul.f32 %v813_v36, %v460_v57 }
 0x11f   :  { %v1122_v38 = vpop.eup %1121  ;;  %v366_v3 = vmul.f32 0.5, %v298_v37  ;;  %v185_v35 = vpop.f32.mrf.mxu0 }
 0x120   :  { %v429_v10 = vadd.f32 1.0, %v1122_v38  ;;  %v877_v41 = vadd.f32 %v1120_v33, %v845_v1 }
 0x121   :  { %1125 = vtanh.f32 %v366_v3 }
 0x122   :  { %v1588_v13 = vpop.f32.mrf.mxu3  ;;  %v683_v16 = vpop.f32.mrf.mxu2  ;;  %v461_v19 = vmul.f32 0.5, %v429_v10  ;;  %909 = vst [vmem:[#allocation8 + $0x60] sm:$0xff] %v877_v41  ;;  %v378_v41 = vmul.f32 0.5, %v1580_v31 }
 0x123   :  { %v765_v22 = vmul.f32 1.442695, %v683_v16  ;;  %v1124_v44 = vpop.eup %1123 }
 0x124   :  { %v814_v5 = vsub.f32 %v182_v21, %v1124_v44 }
 0x125   :  { %1127 = vpow2.f32 %v765_v22 }
 0x126   :  { %v301_v29 = vpop.f32.mrf.mxu1  ;;  %v846_v45 = vmul.f32 %v814_v5, %v461_v19 }
 0x127   :  { %v1126_v39 = vpop.eup %1125  ;;  %v367_v42 = vmul.f32 0.5, %v301_v29  ;;  %v188_v48 = vpop.f32.mrf.mxu0 }
 0x128   :  { %v430_v46 = vadd.f32 1.0, %v1126_v39  ;;  %v878_v49 = vadd.f32 %v1124_v44, %v846_v45 }
 0x129   :  { %1129 = vtanh.f32 %v367_v42 }
 0x12a   :  { %v1590_v50 = vpop.f32.mrf.mxu3  ;;  %v686_v52 = vpop.f32.mrf.mxu2  ;;  %v462_v40 = vmul.f32 0.5, %v430_v46  ;;  %910 = vst [vmem:[#allocation8 + $0x68] sm:$0xff] %v878_v49 }
 0x12b   :  { %v767_v53 = vmul.f32 1.442695, %v686_v52  ;;  %v1128_v54 = vpop.eup %1127 }
 0x12c   :  { %v815_v56 = vsub.f32 %v185_v35, %v1128_v54 }
 0x12d   :  { %1131 = vpow2.f32 %v767_v53 }
 0x12e   :  { %v304_v6 = vpop.f32.mrf.mxu1  ;;  %v847_v60 = vmul.f32 %v815_v56, %v462_v40  ;;  %1133 = vtanh.f32 %v376_v55 }
 0x12f   :  { %v1130_v59 = vpop.eup %1129  ;;  %v368_v61 = vmul.f32 0.5, %v304_v6  ;;  %v191_v62 = vpop.f32.mrf.mxu0 }
 0x130   :  { %v431_v63 = vadd.f32 1.0, %v1130_v59  ;;  %v879_v7 = vadd.f32 %v1128_v54, %v847_v60  ;;  %v379_v59 = vmul.f32 0.5, %v1582_v18 }
 0x131   :  { %1135 = vtanh.f32 %v368_v61 }
 0x132   :  { %v689_v9 = vpop.f32.mrf.mxu2  ;;  %v713_v11 = vpop.f32.mrf.mxu3  ;;  %v463_v27 = vmul.f32 0.5, %v431_v63  ;;  %911 = vst [vmem:[#allocation8 + $0x70] sm:$0xff] %v879_v7 }
 0x133   :  { %v769_v14 = vmul.f32 1.442695, %v689_v9  ;;  %v785_v15 = vmul.f32 1.442695, %v713_v11  ;;  %v1132_v17 = vpop.eup %1131 }
 0x134   :  { %v816_v51 = vsub.f32 %v188_v48, %v1132_v17  ;;  %v1134_v20 = vpop.eup %1133 }
 0x135   :  { %1137 = vpow2.f32 %v769_v14  ;;  %v440_v33 = vadd.f32 1.0, %v1134_v20 }
 0x136   :  { %1139 = vpow2.f32 %v785_v15  ;;  %v307_v21 = vpop.f32.mrf.mxu1  ;;  %v848_v23 = vmul.f32 %v816_v51, %v463_v27 }
 0x137   :  { %v1136_v43 = vpop.eup %1135  ;;  %v369_v26 = vmul.f32 0.5, %v307_v21  ;;  %v194_v57 = vpop.f32.mrf.mxu0  ;;  %1141 = vtanh.f32 %v377_v12  ;;  %v472_v19 = vmul.f32 0.5, %v440_v33 }
 0x138   :  { %v432_v30 = vadd.f32 1.0, %v1136_v43  ;;  %v880_v36 = vadd.f32 %v1132_v17, %v848_v23 }
 0x139   :  { %1143 = vtanh.f32 %v369_v26 }
 0x13a   :  { %v464_v37 = vmul.f32 0.5, %v432_v30  ;;  %v692_v38 = vpop.f32.mrf.mxu2  ;;  %v716_v1 = vpop.f32.mrf.mxu3  ;;  %912 = vst [vmem:[#allocation8 + $0x78] sm:$0xff] %v880_v36  ;;  %v380_v30 = vmul.f32 0.5, %v1584_v4 }
 0x13b   :  { %v1138_v3 = vpop.eup %1137  ;;  %v771_v47 = vmul.f32 1.442695, %v692_v38  ;;  %v787_v35 = vmul.f32 1.442695, %v716_v1 }
 0x13c   :  { %v1140_v10 = vpop.eup %1139  ;;  %v817_v16 = vsub.f32 %v191_v62, %v1138_v3 }
 0x13d   :  { %v825_v22 = vsub.f32 %v1530_v25, %v1140_v10  ;;  %1145 = vpow2.f32 %v771_v47  ;;  %v1142_v44 = vpop.eup %1141 }
 0x13e   :  { %1147 = vpow2.f32 %v787_v35  ;;  %v849_v5 = vmul.f32 %v817_v16, %v464_v37  ;;  %v310_v29 = vpop.f32.mrf.mxu1  ;;  %v441_v52 = vadd.f32 1.0, %v1142_v44 }
 0x13f   :  { %v1144_v39 = vpop.eup %1143  ;;  %v857_v45 = vmul.f32 %v825_v22, %v472_v19  ;;  %v370_v42 = vmul.f32 0.5, %v310_v29  ;;  %v197_v48 = vpop.f32.mrf.mxu0  ;;  %1149 = vtanh.f32 %v378_v41 }
 0x140   :  { %v433_v46 = vadd.f32 1.0, %v1144_v39  ;;  %v881_v49 = vadd.f32 %v1138_v3, %v849_v5  ;;  %v473_v61 = vmul.f32 0.5, %v441_v52 }
 0x141   :  { %v889_v40 = vadd.f32 %v1140_v10, %v857_v45  ;;  %1151 = vtanh.f32 %v370_v42 }
 0x142   :  { %v465_v31 = vmul.f32 0.5, %v433_v46  ;;  %913 = vst [vmem:[#allocation8 + $0x80] sm:$0xff] %v881_v49  ;;  %v695_v53 = vpop.f32.mrf.mxu2  ;;  %v719_v54 = vpop.f32.mrf.mxu3 }
 0x143   :  { %v1146_v25 = vpop.eup %1145  ;;  %921 = vst [vmem:[#allocation8 + $0xc0] sm:$0xff] %v889_v40  ;;  %v773_v55 = vmul.f32 1.442695, %v695_v53  ;;  %v789_v56 = vmul.f32 1.442695, %v719_v54 }
 0x144   :  { %v1148_v6 = vpop.eup %1147  ;;  %v818_v60 = vsub.f32 %v194_v57, %v1146_v25 }
 0x145   :  { %v826_v62 = vsub.f32 %v1537_v58, %v1148_v6  ;;  %1153 = vpow2.f32 %v773_v55  ;;  %v1150_v63 = vpop.eup %1149 }
 0x146   :  { %1155 = vpow2.f32 %v789_v56  ;;  %v850_v7 = vmul.f32 %v818_v60, %v465_v31  ;;  %v313_v9 = vpop.f32.mrf.mxu1  ;;  %v442_v12 = vadd.f32 1.0, %v1150_v63 }
 0x147   :  { %v1152_v11 = vpop.eup %1151  ;;  %v858_v27 = vmul.f32 %v826_v62, %v473_v61  ;;  %v371_v14 = vmul.f32 0.5, %v313_v9  ;;  %1157 = vtanh.f32 %v379_v59  ;;  %v200_v20 = vpop.f32.mrf.mxu0 }
 0x148   :  { %v434_v15 = vadd.f32 1.0, %v1152_v11  ;;  %v882_v17 = vadd.f32 %v1146_v25, %v850_v7  ;;  %v474_v36 = vmul.f32 0.5, %v442_v12  ;;  %v382_v11 = vmul.f32 0.5, %v1588_v13 }
 0x149   :  { %v890_v51 = vadd.f32 %v1148_v6, %v858_v27  ;;  %1159 = vtanh.f32 %v371_v14 }
 0x14a   :  { %v466_v18 = vmul.f32 0.5, %v434_v15  ;;  %914 = vst [vmem:[#allocation8 + $0x88] sm:$0xff] %v882_v17  ;;  %v698_v21 = vpop.f32.mrf.mxu2  ;;  %v722_v43 = vpop.f32.mrf.mxu3 }
 0x14b   :  { %v1154_v58 = vpop.eup %1153  ;;  %922 = vst [vmem:[#allocation8 + $0xc8] sm:$0xff] %v890_v51  ;;  %v775_v23 = vmul.f32 1.442695, %v698_v21  ;;  %v791_v26 = vmul.f32 1.442695, %v722_v43 }
 0x14c   :  { %v1156_v57 = vpop.eup %1155  ;;  %v819_v33 = vsub.f32 %v197_v48, %v1154_v58  ;;  %v381_v48 = vmul.f32 0.5, %v1586_v24 }
 0x14d   :  { %v827_v37 = vsub.f32 %v1545_v28, %v1156_v57  ;;  %1161 = vpow2.f32 %v775_v23  ;;  %v1158_v38 = vpop.eup %1157 }
 0x14e   :  { %1163 = vpow2.f32 %v791_v26  ;;  %v851_v1 = vmul.f32 %v819_v33, %v466_v18  ;;  %v316_v3 = vpop.f32.mrf.mxu1  ;;  %v443_v19 = vadd.f32 1.0, %v1158_v38 }
 0x14f   :  { %v1160_v47 = vpop.eup %1159  ;;  %v859_v35 = vmul.f32 %v827_v37, %v474_v36  ;;  %v372_v10 = vmul.f32 0.5, %v316_v3  ;;  %1165 = vtanh.f32 %v380_v30  ;;  %v203_v45 = vpop.f32.mrf.mxu0 }
 0x150   :  { %v435_v41 = vadd.f32 1.0, %v1160_v47  ;;  %v883_v16 = vadd.f32 %v1154_v58, %v851_v1  ;;  %v475_v49 = vmul.f32 0.5, %v443_v19  ;;  %v383_v1 = vmul.f32 0.5, %v1590_v50 }
 0x151   :  { %v891_v22 = vadd.f32 %v1156_v57, %v859_v35  ;;  %1167 = vtanh.f32 %v372_v10 }
 0x152   :  { %v467_v44 = vmul.f32 0.5, %v435_v41  ;;  %915 = vst [vmem:[#allocation8 + $0x90] sm:$0xff] %v883_v16  ;;  %v701_v4 = vpop.f32.mrf.mxu2  ;;  %v725_v5 = vpop.f32.mrf.mxu3 }
 0x153   :  { %v1162_v29 = vpop.eup %1161  ;;  %923 = vst [vmem:[#allocation8 + $0xd0] sm:$0xff] %v891_v22  ;;  %v777_v28 = vmul.f32 1.442695, %v701_v4  ;;  %v793_v39 = vmul.f32 1.442695, %v725_v5 }
 0x154   :  { %v1164_v42 = vpop.eup %1163  ;;  %v820_v46 = vsub.f32 %v200_v20, %v1162_v29 }
 0x155   :  { %v828_v52 = vsub.f32 %v1553_v34, %v1164_v42  ;;  %1169 = vpow2.f32 %v777_v28  ;;  %v1166_v40 = vpop.eup %1165 }
 0x156   :  { %1171 = vpow2.f32 %v793_v39  ;;  %v852_v31 = vmul.f32 %v820_v46, %v467_v44  ;;  %v319_v53 = vpop.f32.mrf.mxu1  ;;  %v444_v59 = vadd.f32 1.0, %v1166_v40 }
 0x157   :  { %v1168_v54 = vpop.eup %1167  ;;  %v860_v25 = vmul.f32 %v828_v52, %v475_v49  ;;  %v373_v55 = vmul.f32 0.5, %v319_v53  ;;  %1173 = vtanh.f32 %v381_v48  ;;  %v206_v17 = vpop.f32.mrf.mxu0 }
 0x158   :  { %v436_v56 = vadd.f32 1.0, %v1168_v54  ;;  %v884_v6 = vadd.f32 %v1162_v29, %v852_v31  ;;  %v476_v14 = vmul.f32 0.5, %v444_v59 }
 0x159   :  { %v892_v60 = vadd.f32 %v1164_v42, %v860_v25  ;;  %1175 = vtanh.f32 %v373_v55 }
 0x15a   :  { %v468_v61 = vmul.f32 0.5, %v436_v56  ;;  %916 = vst [vmem:[#allocation8 + $0x98] sm:$0xff] %v884_v6  ;;  %v704_v24 = vpop.f32.mrf.mxu2  ;;  %v728_v62 = vpop.f32.mrf.mxu3 }
 0x15b   :  { %v1170_v63 = vpop.eup %1169  ;;  %924 = vst [vmem:[#allocation8 + $0xd8] sm:$0xff] %v892_v60  ;;  %v779_v34 = vmul.f32 1.442695, %v704_v24  ;;  %v795_v7 = vmul.f32 1.442695, %v728_v62 }
 0x15c   :  { %v1172_v9 = vpop.eup %1171  ;;  %v821_v27 = vsub.f32 %v203_v45, %v1170_v63 }
 0x15d   :  { %v829_v15 = vsub.f32 %v1561_v2, %v1172_v9  ;;  %1177 = vpow2.f32 %v779_v34  ;;  %v1174_v12 = vpop.eup %1173 }
 0x15e   :  { %1179 = vpow2.f32 %v795_v7  ;;  %v853_v51 = vmul.f32 %v821_v27, %v468_v61  ;;  %v322_v20 = vpop.f32.mrf.mxu1  ;;  %v445_v26 = vadd.f32 1.0, %v1174_v12 }
 0x15f   :  { %v1176_v18 = vpop.eup %1175  ;;  %v861_v21 = vmul.f32 %v829_v15, %v476_v14  ;;  %v374_v43 = vmul.f32 0.5, %v322_v20  ;;  %1181 = vtanh.f32 %v382_v11  ;;  %v209_v4 = vpop.f32.mrf.mxu0 }
 0x160   :  { %v437_v58 = vadd.f32 1.0, %v1176_v18  ;;  %v885_v23 = vadd.f32 %v1170_v63, %v853_v51  ;;  %v477_v47 = vmul.f32 0.5, %v445_v26 }
 0x161   :  { %v893_v57 = vadd.f32 %v1172_v9, %v861_v21  ;;  %1183 = vtanh.f32 %v374_v43 }
 0x162   :  { %v469_v13 = vmul.f32 0.5, %v437_v58  ;;  %917 = vst [vmem:[#allocation8 + $0xa0] sm:$0xff] %v885_v23  ;;  %v707_v30 = vpop.f32.mrf.mxu2  ;;  %v731_v33 = vpop.f32.mrf.mxu3 }
 0x163   :  { %v1178_v2 = vpop.eup %1177  ;;  %925 = vst [vmem:[#allocation8 + $0xe0] sm:$0xff] %v893_v57  ;;  %v781_v36 = vmul.f32 1.442695, %v707_v30  ;;  %v797_v37 = vmul.f32 1.442695, %v731_v33 }
 0x164   :  { %v1180_v38 = vpop.eup %1179  ;;  %v822_v3 = vsub.f32 %v206_v17, %v1178_v2 }
 0x165   :  { %v830_v35 = vsub.f32 %v1565_v32, %v1180_v38  ;;  %1185 = vpow2.f32 %v781_v36  ;;  %v1182_v10 = vpop.eup %1181 }
 0x166   :  { %1187 = vpow2.f32 %v797_v37  ;;  %v854_v41 = vmul.f32 %v822_v3, %v469_v13  ;;  %v325_v16 = vpop.f32.mrf.mxu1  ;;  %v446_v28 = vadd.f32 1.0, %v1182_v10 }
 0x167   :  { %v1184_v19 = vpop.eup %1183  ;;  %v862_v22 = vmul.f32 %v830_v35, %v477_v47  ;;  %v375_v44 = vmul.f32 0.5, %v325_v16  ;;  %1189 = vtanh.f32 %v383_v1  ;;  %v212_v61 = vpop.f32.mrf.mxu0 }
 0x168   :  { %v438_v5 = vadd.f32 1.0, %v1184_v19  ;;  %v886_v29 = vadd.f32 %v1178_v2, %v854_v41  ;;  %v478_v40 = vmul.f32 0.5, %v446_v28 }
 0x169   :  { %v894_v39 = vadd.f32 %v1180_v38, %v862_v22  ;;  %1191 = vtanh.f32 %v375_v44 }
 0x16a   :  { %v470_v50 = vmul.f32 0.5, %v438_v5  ;;  %918 = vst [vmem:[#allocation8 + $0xa8] sm:$0xff] %v886_v29  ;;  %v710_v45 = vpop.f32.mrf.mxu2  ;;  %v734_v42 = vpop.f32.mrf.mxu3 }
 0x16b   :  { %v1186_v32 = vpop.eup %1185  ;;  %926 = vst [vmem:[#allocation8 + $0xe8] sm:$0xff] %v894_v39  ;;  %v783_v48 = vmul.f32 1.442695, %v710_v45  ;;  %v799_v46 = vmul.f32 1.442695, %v734_v42 }
 0x16c   :  { %v1188_v49 = vpop.eup %1187  ;;  %v823_v52 = vsub.f32 %v209_v4, %v1186_v32 }
 0x16d   :  { %v831_v31 = vsub.f32 %v1569_v8, %v1188_v49  ;;  %1193 = vpow2.f32 %v783_v48  ;;  %v1190_v53 = vpop.eup %1189 }
 0x16e   :  { %1195 = vpow2.f32 %v799_v46  ;;  %v855_v54 = vmul.f32 %v823_v52, %v470_v50  ;;  %v447_v59 = vadd.f32 1.0, %v1190_v53 }
 0x16f   :  { %v1192_v25 = vpop.eup %1191  ;;  %v863_v55 = vmul.f32 %v831_v31, %v478_v40 }
 0x170   :  { %v439_v56 = vadd.f32 1.0, %v1192_v25  ;;  %v887_v6 = vadd.f32 %v1186_v32, %v855_v54  ;;  %v479_v7 = vmul.f32 0.5, %v447_v59 }
 0x171   :  { %v895_v60 = vadd.f32 %v1188_v49, %v863_v55 }
 0x172   :  { %v471_v24 = vmul.f32 0.5, %v439_v56  ;;  %919 = vst [vmem:[#allocation8 + $0xb0] sm:$0xff] %v887_v6 }
 0x173   :  { %v1194_v62 = vpop.eup %1193  ;;  %927 = vst [vmem:[#allocation8 + $0xf0] sm:$0xff] %v895_v60 }
 0x174   :  { %v1196_v63 = vpop.eup %1195  ;;  %v824_v34 = vsub.f32 %v212_v61, %v1194_v62 }
 0x175   :  { %v832_v8 = vsub.f32 %v1573_v0, %v1196_v63 }
 0x176   :  { %v856_v9 = vmul.f32 %v824_v34, %v471_v24 }
 0x177   :  { %v864_v11 = vmul.f32 %v832_v8, %v479_v7 }
 0x178   :  { %v888_v27 = vadd.f32 %v1194_v62, %v856_v9 }
 0x179   :  { %v896_v14 = vadd.f32 %v1196_v63, %v864_v11 }
 0x17a   :  { %920 = vst [vmem:[#allocation8 + $0xb8] sm:$0xff] %v888_v27 }
 0x17b   :  { %928 = vst [vmem:[#allocation8 + $0xf8] sm:$0xff] %v896_v14 }
 0x17c   :  { %941 = dma.vmem_to_hbm [thread:$0]  %s934_s29, 4096, %s936_s5, [#allocation4], %s1303_s24, %s1303_s24, %s1304_s25  }
 0x17d   :  { %1297 = dma.done.wait [#allocation4], 4096  }
 0x17e   :  { %1298 = vsyncadd [#allocation4], 4294963200 }
 0x17f   :  { %946 = vsyncpa [#allocation3], 1 }
 0x180   :  { %947 = vsyncpa [#allocation6], 1 }
 0x181   :  { %948 = vsyncpa [#allocation4], 1 }

</bundles_post_ra>
